<compile_context>
chip_gen: v6e
topology: v6e:2x2x1
jax: 0.10.0
libtpu: 0.0.40
codegen_flags: <defaults>
</compile_context>

<pallas_src>
import functools

import numpy as np
import jax
import jax.numpy as jnp
from jax import lax
from jax.experimental import pallas as pl
from jax.experimental.pallas import tpu as pltpu


def _cdiv(a, b):
    return (a + b - 1) // b


# ---------------------------------------------------------------------------
# Fused kernel: conv1 -> relu -> conv2 -> pool -> relu -> conv3 -> pool -> relu
#               (per sample, unrolled over Bt) then fc1 -> relu -> fc2 -> relu
#               (= e1) -> fc3, batched over the Bt samples of the block.
# ---------------------------------------------------------------------------
def fused_kernel(bt, x_ref, t1_ref, bc1_ref, t2_ref, bc2_ref, t3_ref, bc3_ref,
                 sr16_ref, pc2_ref, sr8_ref, pc3_ref,
                 w1r_ref, fb1_ref, w2t_ref, fb2_ref, w3t_ref, fb3_ref,
                 out_ref, xpad, pad1, pad2, feat):
    f32 = jnp.float32

    def dot(a, b):
        return jnp.dot(a, b, preferred_element_type=f32)

    # Zero height-halo rows once per block; the per-sample writes below never
    # touch them, so they stay zero for every sample of the block.
    xpad[0:2, :] = jnp.zeros((2, 128), f32)
    xpad[18:20, :] = jnp.zeros((2, 128), f32)
    pad1[0:1, :] = jnp.zeros((1, 32), f32)
    pad1[17:18, :] = jnp.zeros((1, 32), f32)
    pad2[0:1, :] = jnp.zeros((1, 32), f32)
    pad2[9:10, :] = jnp.zeros((1, 32), f32)

    # ---- per-sample conv stack (statically unrolled over the Bt block) ------
    for s in range(bt):
        xpad[2:18, :] = x_ref[s]                      # (16, 128) = (H, C_in*W)

        # conv1: 8->2, k5, p2 (+bias, ReLU).  Each ky tap is one MXU matmul;
        # kx shifts / channel mix / padding clip are folded into t1.
        acc1 = dot(xpad[0:16, :], t1_ref[0])
        for ky in range(1, 5):
            acc1 = acc1 + dot(xpad[ky:ky + 16, :], t1_ref[ky])
        z1 = jnp.maximum(acc1 + bc1_ref[...], 0.0)    # (16, 32) = (H, 2*16)
        pad1[1:17, :] = z1

        # conv2: 2->4, k3, p1 (+bias; ReLU comes after the pool)
        acc2 = dot(pad1[0:16, :], t2_ref[0])
        for ky in range(1, 3):
            acc2 = acc2 + dot(pad1[ky:ky + 16, :], t2_ref[ky])
        z2 = acc2 + bc2_ref[...]                      # (16, 64) = (H, 4*16)

        # maxpool 2x2 + ReLU: row-max first, then 2 column-pool matmuls.
        rmax2 = jnp.maximum(dot(sr16_ref[0], z2), dot(sr16_ref[1], z2))  # (8, 64)
        z2p = jnp.maximum(
            jnp.maximum(dot(rmax2, pc2_ref[0]), dot(rmax2, pc2_ref[1])), 0.0)  # (8, 32)
        pad2[1:9, :] = z2p

        # conv3: 4->4, k3, p1 (+bias).
        # TODO(synk): Dropout2d is identity here (inference / eval mode).
        acc3 = dot(pad2[0:8, :], t3_ref[0])
        for ky in range(1, 3):
            acc3 = acc3 + dot(pad2[ky:ky + 8, :], t3_ref[ky])
        z3 = acc3 + bc3_ref[...]                      # (8, 32) = (8, 4*8)

        # maxpool 2x2 + ReLU -> Q[y, co*4 + x]
        rmax3 = jnp.maximum(dot(sr8_ref[0], z3), dot(sr8_ref[1], z3))    # (4, 32)
        q = jnp.maximum(
            jnp.maximum(dot(rmax3, pc3_ref[0]), dot(rmax3, pc3_ref[1])), 0.0)  # (4, 16)

        for y in range(4):                            # pooled features for fc1
            feat[y, s:s + 1, :] = q[y:y + 1, :]

    # ---- batched FC head (M = Bt) -------------------------------------------
    # fc1: the .view(-1, 64) NCHW flatten is folded into w1r; tree-sum the 4
    # per-row partials instead of a serial chain.
    h = ((dot(feat[0], w1r_ref[0]) + dot(feat[1], w1r_ref[1]))
         + (dot(feat[2], w1r_ref[2]) + dot(feat[3], w1r_ref[3])))
    h = jnp.maximum(h + fb1_ref[...], 0.0)            # (Bt, 400)

    # fc2 + ReLU (= e1); F.dropout == identity at inference.
    e1 = jnp.maximum(dot(h, w2t_ref[...]) + fb2_ref[...], 0.0)   # (Bt, 50)

    # fc3
    logits = dot(e1, w3t_ref[...]) + fb3_ref[...]                # (Bt, 2)

    # One lane-dense output slab per block: lanes 0:50 = e1, 50:52 = logits.
    out_ref[0, :, 0:50] = e1
    out_ref[0, :, 50:52] = logits
    out_ref[0, :, 52:64] = jnp.zeros((bt, 12), f32)


# ---------------------------------------------------------------------------
# One-time weight preparation (done at init, NOT per forward call)
# ---------------------------------------------------------------------------
def prepare_params(params):
    (c1w, c1b, c2w, c2b, c3w, c3b,
     f1w, f1b, f2w, f2b, f3w, f3b) = [np.asarray(p, np.float32) for p in params]

    def conv_toeplitz(w, w_in, w_out):
        # T[ky][(ci, xi), (co, xo)] = w[co, ci, ky, kx]  with xi = xo + kx - pad,
        # clipped to the real input range (padded columns contribute 0), so the
        # input/output slabs carry NO width halo.
        co_n, ci_n, k, _ = w.shape
        pad = (k - 1) // 2
        t = np.zeros((k, ci_n * w_in, co_n * w_out), np.float32)
        for ky in range(k):
            for co in range(co_n):
                for ci in range(ci_n):
                    for xo in range(w_out):
                        for kx in range(k):
                            xi = xo + kx - pad
                            if 0 <= xi < w_in:
                                t[ky, ci * w_in + xi, co * w_out + xo] += \
                                    w[co, ci, ky, kx]
        return t

    t1 = conv_toeplitz(c1w, 16, 16)        # (5, 128, 32)
    t2 = conv_toeplitz(c2w, 16, 16)        # (3, 32, 64)
    t3 = conv_toeplitz(c3w, 8, 8)          # (3, 32, 32)

    bc1 = np.repeat(c1b, 16)[None, :]      # (1, 32)
    bc2 = np.repeat(c2b, 16)[None, :]      # (1, 64)
    bc3 = np.repeat(c3b, 8)[None, :]       # (1, 32)

    def row_sel(n):                        # sel[r, i, 2i + r] = 1
        s = np.zeros((2, n, 2 * n), np.float32)
        for r in range(2):
            for i in range(n):
                s[r, i, 2 * i + r] = 1.0
        return s

    sr16 = row_sel(8)                      # (2, 8, 16)
    sr8 = row_sel(4)                       # (2, 4, 8)

    def col_pool(c_n, w_in):               # block-diagonal column-pool selectors
        w_out = w_in // 2
        p = np.zeros((2, c_n * w_in, c_n * w_out), np.float32)
        for c in range(2):
            for co in range(c_n):
                for xp in range(w_out):
                    p[c, co * w_in + 2 * xp + c, co * w_out + xp] = 1.0
        return p

    pc2 = col_pool(4, 16)                  # (2, 64, 32)
    pc3 = col_pool(4, 8)                   # (2, 32, 16)

    # fc1 weight with the NCHW flatten (f = co*16 + y*4 + x) folded in:
    # w1r[y, co*4 + x, j] = f1w[j, co*16 + y*4 + x]
    w1r = f1w.reshape(400, 4, 4, 4).transpose(2, 1, 3, 0).reshape(4, 16, 400)
    fb1 = f1b.reshape(1, 400)
    w2t = np.ascontiguousarray(f2w.T)      # (400, 50)
    fb2 = f2b.reshape(1, 50)
    w3t = np.ascontiguousarray(f3w.T)      # (50, 2)
    fb3 = f3b.reshape(1, 2)

    return tuple(jnp.asarray(a) for a in (t1, bc1, t2, bc2, t3, bc3,
                                          sr16, pc2, sr8, pc3,
                                          w1r, fb1, w2t, fb2, w3t, fb3))


# ---------------------------------------------------------------------------
# Jitted forward: single fused pallas_call, Bt samples per grid step
# ---------------------------------------------------------------------------
@jax.jit
def network_forward(x, prepped):
    consts = prepped
    B = x.shape[0]
    assert x.shape[1:] == (8, 16, 16), "module implies 8x16x16 inputs"

    # Block size: batch the FC head over Bt samples, but keep grid >= 2 when
    # B >= 2 so both v7x TensorCores get work.
    bt = max(1, min(8, _cdiv(B, 2)))
    nb = _cdiv(B, bt)
    bp = nb * bt

    # Host side is a bare transpose: slab[b, y, ci*16 + x] = x[b, ci, y, x].
    # Height halo rows are built inside the kernel; no width halo exists.
    x_slab = x.astype(jnp.float32).transpose(0, 2, 1, 3).reshape(B, 16, 128)
    if bp != B:
        x_slab = jnp.pad(x_slab, ((0, bp - B), (0, 0), (0, 0)))

    def const_spec(arr):
        zeros = (0,) * arr.ndim
        return pl.BlockSpec(arr.shape, lambda b, z=zeros: z)

    in_specs = ([pl.BlockSpec((bt, 16, 128), lambda b: (b, 0, 0))]
                + [const_spec(a) for a in consts])

    out = pl.pallas_call(
        functools.partial(fused_kernel, bt),
        out_shape=jax.ShapeDtypeStruct((nb, bt, 64), jnp.float32),
        grid=(nb,),
        in_specs=in_specs,
        out_specs=pl.BlockSpec((1, bt, 64), lambda b: (b, 0, 0)),
        scratch_shapes=[pltpu.VMEM((20, 128), jnp.float32),   # padded conv1 input
                        pltpu.VMEM((18, 32), jnp.float32),    # padded relu(conv1)
                        pltpu.VMEM((10, 32), jnp.float32),    # padded relu(pool(conv2))
                        pltpu.VMEM((4, bt, 16), jnp.float32)],  # pooled features
        compiler_params=pltpu.CompilerParams(
            dimension_semantics=("parallel",)),
    )(x_slab, *consts)

    out = out.reshape(bp, 64)
    return out[:B, 50:52], out[:B, 0:50]              # (logits, e1)


# ---------------------------------------------------------------------------
# Pure-JAX reference (same semantics as the PyTorch module in eval mode)
# ---------------------------------------------------------------------------
def reference_forward(x, params):
    (c1w, c1b, c2w, c2b, c3w, c3b,
     f1w, f1b, f2w, f2b, f3w, f3b) = params

    def conv(h, w, b, p):
        y = lax.conv_general_dilated(h, w, (1, 1), [(p, p), (p, p)],
                                     dimension_numbers=('NCHW', 'OIHW', 'NCHW'))
        return y + b[None, :, None, None]

    def pool(h):
        return lax.reduce_window(h, -jnp.inf, lax.max,
                                 (1, 1, 2, 2), (1, 1, 2, 2), 'VALID')

    h = jax.nn.relu(conv(x.astype(jnp.float32), c1w, c1b, 2))
    h = jax.nn.relu(pool(conv(h, c2w, c2b, 1)))
    h = jax.nn.relu(pool(conv(h, c3w, c3b, 1)))      # dropout2d = identity (eval)
    h = h.reshape(-1, 64)
    h = jax.nn.relu(h @ f1w.T + f1b)
    e1 = jax.nn.relu(h @ f2w.T + f2b)
    out = e1 @ f3w.T + f3b                           # dropout = identity (eval)
    return out, e1


def init_params(key):
    shapes = [((2, 8, 5, 5), 0.1), ((2,), 0.1),      # conv1
              ((4, 2, 3, 3), 0.1), ((4,), 0.1),      # conv2
              ((4, 4, 3, 3), 0.1), ((4,), 0.1),      # conv3
              ((400, 64), 0.05), ((400,), 0.05),     # fc1
              ((50, 400), 0.05), ((50,), 0.05),      # fc2
              ((2, 50), 0.05), ((2,), 0.05)]         # fc3
    keys = jax.random.split(key, len(shapes))
    return tuple(scale * jax.random.normal(k, shp, jnp.float32)
                 for k, (shp, scale) in zip(keys, shapes))


if __name__ == "__main__":
    root = jax.random.PRNGKey(0)
    k_params, k_x = jax.random.split(root)
    params = init_params(k_params)
    prepped = prepare_params(params)            # one-time weight repacking

    # B=2 (Bt=1, grid=2), B=5 (Bt=3, padded to 6), B=16 (Bt=8, grid=2)
    for B in (2, 5, 16):
        kx = jax.random.fold_in(k_x, B)
        x = jax.random.normal(kx, (B, 8, 16, 16), jnp.float32)

        out, e1 = network_forward(x, prepped)
        jax.block_until_ready((out, e1))

        ref_out, ref_e1 = reference_forward(x, params)
        np.testing.assert_allclose(np.asarray(out), np.asarray(ref_out),
                                   rtol=1e-4, atol=1e-4)
        np.testing.assert_allclose(np.asarray(e1), np.asarray(ref_e1),
                                   rtol=1e-4, atol=1e-4)
        assert out.shape == (B, 2) and e1.shape == (B, 50)

    print("KERNEL_OK")
</pallas_src>

<mosaic_0001>
module attributes {stable_mosaic.version = 11 : i64} {
  func.func @fused_kernel(%arg0: i32, %arg1: memref<1x16x128xf32, #tpu.memory_space<vmem>>, %arg2: memref<5x128x32xf32, #tpu.memory_space<vmem>>, %arg3: memref<1x32xf32, #tpu.memory_space<vmem>>, %arg4: memref<3x32x64xf32, #tpu.memory_space<vmem>>, %arg5: memref<1x64xf32, #tpu.memory_space<vmem>>, %arg6: memref<3x32x32xf32, #tpu.memory_space<vmem>>, %arg7: memref<1x32xf32, #tpu.memory_space<vmem>>, %arg8: memref<2x8x16xf32, #tpu.memory_space<vmem>>, %arg9: memref<2x64x32xf32, #tpu.memory_space<vmem>>, %arg10: memref<2x4x8xf32, #tpu.memory_space<vmem>>, %arg11: memref<2x32x16xf32, #tpu.memory_space<vmem>>, %arg12: memref<4x16x400xf32, #tpu.memory_space<vmem>>, %arg13: memref<1x400xf32, #tpu.memory_space<vmem>>, %arg14: memref<400x50xf32, #tpu.memory_space<vmem>>, %arg15: memref<1x50xf32, #tpu.memory_space<vmem>>, %arg16: memref<50x2xf32, #tpu.memory_space<vmem>>, %arg17: memref<1x2xf32, #tpu.memory_space<vmem>>, %arg18: memref<1x1x64xf32, #tpu.memory_space<vmem>>, %arg19: memref<20x128xf32, #tpu.memory_space<vmem>>, %arg20: memref<18x32xf32, #tpu.memory_space<vmem>>, %arg21: memref<10x32xf32, #tpu.memory_space<vmem>>, %arg22: memref<4x1x16xf32, #tpu.memory_space<vmem>>) attributes {dimension_semantics = [#tpu.dimension_semantics<parallel>], iteration_bounds = array<i64: 2>, scalar_prefetch = 0 : i64, scratch_operands = 4 : i64, tpu.core_type = #tpu.core_type<tc>, window_params = [{transform_indices = @transform_0, window_bounds = array<i64: 1, 16, 128>}, {pipeline_mode = #tpu.pipeline_mode<synchronous>, transform_indices = @transform_1, window_bounds = array<i64: 5, 128, 32>}, {pipeline_mode = #tpu.pipeline_mode<synchronous>, transform_indices = @transform_2, window_bounds = array<i64: 1, 32>}, {pipeline_mode = #tpu.pipeline_mode<synchronous>, transform_indices = @transform_3, window_bounds = array<i64: 3, 32, 64>}, {pipeline_mode = #tpu.pipeline_mode<synchronous>, transform_indices = @transform_4, window_bounds = array<i64: 1, 64>}, {pipeline_mode = #tpu.pipeline_mode<synchronous>, transform_indices = @transform_5, window_bounds = array<i64: 3, 32, 32>}, {pipeline_mode = #tpu.pipeline_mode<synchronous>, transform_indices = @transform_6, window_bounds = array<i64: 1, 32>}, {pipeline_mode = #tpu.pipeline_mode<synchronous>, transform_indices = @transform_7, window_bounds = array<i64: 2, 8, 16>}, {pipeline_mode = #tpu.pipeline_mode<synchronous>, transform_indices = @transform_8, window_bounds = array<i64: 2, 64, 32>}, {pipeline_mode = #tpu.pipeline_mode<synchronous>, transform_indices = @transform_9, window_bounds = array<i64: 2, 4, 8>}, {pipeline_mode = #tpu.pipeline_mode<synchronous>, transform_indices = @transform_10, window_bounds = array<i64: 2, 32, 16>}, {pipeline_mode = #tpu.pipeline_mode<synchronous>, transform_indices = @transform_11, window_bounds = array<i64: 4, 16, 400>}, {pipeline_mode = #tpu.pipeline_mode<synchronous>, transform_indices = @transform_12, window_bounds = array<i64: 1, 400>}, {pipeline_mode = #tpu.pipeline_mode<synchronous>, transform_indices = @transform_13, window_bounds = array<i64: 400, 50>}, {pipeline_mode = #tpu.pipeline_mode<synchronous>, transform_indices = @transform_14, window_bounds = array<i64: 1, 50>}, {pipeline_mode = #tpu.pipeline_mode<synchronous>, transform_indices = @transform_15, window_bounds = array<i64: 50, 2>}, {pipeline_mode = #tpu.pipeline_mode<synchronous>, transform_indices = @transform_16, window_bounds = array<i64: 1, 2>}, {transform_indices = @transform_17, window_bounds = array<i64: 1, 1, 64>}]} {
    %cst = arith.constant 0.000000e+00 : f32
    %0 = vector.broadcast %cst : f32 to vector<2x128xf32>
    %c0 = arith.constant 0 : index
    %c0_0 = arith.constant 0 : index
    %1 = vector.load %arg19[%c0, %c0_0] : memref<20x128xf32, #tpu.memory_space<vmem>>, vector<2x128xf32>
    tpu.vector_store %arg19[%c0, %c0_0], %0 {strides = array<i32>} : memref<20x128xf32, #tpu.memory_space<vmem>>, vector<2x128xf32>,
    %cst_1 = arith.constant 0.000000e+00 : f32
    %2 = vector.broadcast %cst_1 : f32 to vector<2x128xf32>
    %c18 = arith.constant 18 : index
    %c0_2 = arith.constant 0 : index
    %3 = vector.load %arg19[%c18, %c0_2] : memref<20x128xf32, #tpu.memory_space<vmem>>, vector<2x128xf32>
    tpu.vector_store %arg19[%c18, %c0_2], %2 {strides = array<i32>} : memref<20x128xf32, #tpu.memory_space<vmem>>, vector<2x128xf32>,
    %cst_3 = arith.constant 0.000000e+00 : f32
    %4 = vector.broadcast %cst_3 : f32 to vector<1x32xf32>
    %c0_4 = arith.constant 0 : index
    %c0_5 = arith.constant 0 : index
    %5 = vector.load %arg20[%c0_4, %c0_5] : memref<18x32xf32, #tpu.memory_space<vmem>>, vector<1x32xf32>
    tpu.vector_store %arg20[%c0_4, %c0_5], %4 {strides = array<i32>} : memref<18x32xf32, #tpu.memory_space<vmem>>, vector<1x32xf32>,
    %cst_6 = arith.constant 0.000000e+00 : f32
    %6 = vector.broadcast %cst_6 : f32 to vector<1x32xf32>
    %c17 = arith.constant 17 : index
    %c0_7 = arith.constant 0 : index
    %7 = vector.load %arg20[%c17, %c0_7] : memref<18x32xf32, #tpu.memory_space<vmem>>, vector<1x32xf32>
    tpu.vector_store %arg20[%c17, %c0_7], %6 {strides = array<i32>} : memref<18x32xf32, #tpu.memory_space<vmem>>, vector<1x32xf32>,
    %cst_8 = arith.constant 0.000000e+00 : f32
    %8 = vector.broadcast %cst_8 : f32 to vector<1x32xf32>
    %c0_9 = arith.constant 0 : index
    %c0_10 = arith.constant 0 : index
    %9 = vector.load %arg21[%c0_9, %c0_10] : memref<10x32xf32, #tpu.memory_space<vmem>>, vector<1x32xf32>
    tpu.vector_store %arg21[%c0_9, %c0_10], %8 {strides = array<i32>} : memref<10x32xf32, #tpu.memory_space<vmem>>, vector<1x32xf32>,
    %cst_11 = arith.constant 0.000000e+00 : f32
    %10 = vector.broadcast %cst_11 : f32 to vector<1x32xf32>
    %c9 = arith.constant 9 : index
    %c0_12 = arith.constant 0 : index
    %11 = vector.load %arg21[%c9, %c0_12] : memref<10x32xf32, #tpu.memory_space<vmem>>, vector<1x32xf32>
    tpu.vector_store %arg21[%c9, %c0_12], %10 {strides = array<i32>} : memref<10x32xf32, #tpu.memory_space<vmem>>, vector<1x32xf32>,
    %c0_13 = arith.constant 0 : index
    %c0_14 = arith.constant 0 : index
    %c0_15 = arith.constant 0 : index
    %12 = vector.load %arg1[%c0_13, %c0_14, %c0_15] : memref<1x16x128xf32, #tpu.memory_space<vmem>>, vector<1x16x128xf32>
    %13 = vector.shape_cast %12 : vector<1x16x128xf32> to vector<16x128xf32>
    %c2 = arith.constant 2 : index
    %c0_16 = arith.constant 0 : index
    %14 = vector.load %arg19[%c2, %c0_16] : memref<20x128xf32, #tpu.memory_space<vmem>>, vector<16x128xf32>
    tpu.vector_store %arg19[%c2, %c0_16], %13 {strides = array<i32>} : memref<20x128xf32, #tpu.memory_space<vmem>>, vector<16x128xf32>,
    %c0_17 = arith.constant 0 : index
    %c0_18 = arith.constant 0 : index
    %15 = vector.load %arg19[%c0_17, %c0_18] : memref<20x128xf32, #tpu.memory_space<vmem>>, vector<16x128xf32>
    %c0_19 = arith.constant 0 : index
    %c0_20 = arith.constant 0 : index
    %c0_21 = arith.constant 0 : index
    %16 = vector.load %arg2[%c0_19, %c0_20, %c0_21] : memref<5x128x32xf32, #tpu.memory_space<vmem>>, vector<1x128x32xf32>
    %17 = vector.shape_cast %16 : vector<1x128x32xf32> to vector<128x32xf32>
    %cst_22 = arith.constant dense<0.000000e+00> : vector<16x32xf32>
    %18 = tpu.matmul %15, %17, %cst_22 {dimension_numbers = #tpu.dot_dimension_numbers<[1], [0], [0], [1], [0, 0, 1, 1], [], []>} : vector<16x128xf32>, vector<128x32xf32>, vector<16x32xf32> -> vector<16x32xf32>
    %c1 = arith.constant 1 : index
    %c0_23 = arith.constant 0 : index
    %19 = vector.load %arg19[%c1, %c0_23] : memref<20x128xf32, #tpu.memory_space<vmem>>, vector<16x128xf32>
    %c1_24 = arith.constant 1 : index
    %c0_25 = arith.constant 0 : index
    %c0_26 = arith.constant 0 : index
    %20 = vector.load %arg2[%c1_24, %c0_25, %c0_26] : memref<5x128x32xf32, #tpu.memory_space<vmem>>, vector<1x128x32xf32>
    %21 = vector.shape_cast %20 : vector<1x128x32xf32> to vector<128x32xf32>
    %cst_27 = arith.constant dense<0.000000e+00> : vector<16x32xf32>
    %22 = tpu.matmul %19, %21, %cst_27 {dimension_numbers = #tpu.dot_dimension_numbers<[1], [0], [0], [1], [0, 0, 1, 1], [], []>} : vector<16x128xf32>, vector<128x32xf32>, vector<16x32xf32> -> vector<16x32xf32>
    %23 = arith.addf %18, %22 : vector<16x32xf32>
    %c2_28 = arith.constant 2 : index
    %c0_29 = arith.constant 0 : index
    %24 = vector.load %arg19[%c2_28, %c0_29] : memref<20x128xf32, #tpu.memory_space<vmem>>, vector<16x128xf32>
    %c2_30 = arith.constant 2 : index
    %c0_31 = arith.constant 0 : index
    %c0_32 = arith.constant 0 : index
    %25 = vector.load %arg2[%c2_30, %c0_31, %c0_32] : memref<5x128x32xf32, #tpu.memory_space<vmem>>, vector<1x128x32xf32>
    %26 = vector.shape_cast %25 : vector<1x128x32xf32> to vector<128x32xf32>
    %cst_33 = arith.constant dense<0.000000e+00> : vector<16x32xf32>
    %27 = tpu.matmul %24, %26, %cst_33 {dimension_numbers = #tpu.dot_dimension_numbers<[1], [0], [0], [1], [0, 0, 1, 1], [], []>} : vector<16x128xf32>, vector<128x32xf32>, vector<16x32xf32> -> vector<16x32xf32>
    %28 = arith.addf %23, %27 : vector<16x32xf32>
    %c3 = arith.constant 3 : index
    %c0_34 = arith.constant 0 : index
    %29 = vector.load %arg19[%c3, %c0_34] : memref<20x128xf32, #tpu.memory_space<vmem>>, vector<16x128xf32>
    %c3_35 = arith.constant 3 : index
    %c0_36 = arith.constant 0 : index
    %c0_37 = arith.constant 0 : index
    %30 = vector.load %arg2[%c3_35, %c0_36, %c0_37] : memref<5x128x32xf32, #tpu.memory_space<vmem>>, vector<1x128x32xf32>
    %31 = vector.shape_cast %30 : vector<1x128x32xf32> to vector<128x32xf32>
    %cst_38 = arith.constant dense<0.000000e+00> : vector<16x32xf32>
    %32 = tpu.matmul %29, %31, %cst_38 {dimension_numbers = #tpu.dot_dimension_numbers<[1], [0], [0], [1], [0, 0, 1, 1], [], []>} : vector<16x128xf32>, vector<128x32xf32>, vector<16x32xf32> -> vector<16x32xf32>
    %33 = arith.addf %28, %32 : vector<16x32xf32>
    %c4 = arith.constant 4 : index
    %c0_39 = arith.constant 0 : index
    %34 = vector.load %arg19[%c4, %c0_39] : memref<20x128xf32, #tpu.memory_space<vmem>>, vector<16x128xf32>
    %c4_40 = arith.constant 4 : index
    %c0_41 = arith.constant 0 : index
    %c0_42 = arith.constant 0 : index
    %35 = vector.load %arg2[%c4_40, %c0_41, %c0_42] : memref<5x128x32xf32, #tpu.memory_space<vmem>>, vector<1x128x32xf32>
    %36 = vector.shape_cast %35 : vector<1x128x32xf32> to vector<128x32xf32>
    %cst_43 = arith.constant dense<0.000000e+00> : vector<16x32xf32>
    %37 = tpu.matmul %34, %36, %cst_43 {dimension_numbers = #tpu.dot_dimension_numbers<[1], [0], [0], [1], [0, 0, 1, 1], [], []>} : vector<16x128xf32>, vector<128x32xf32>, vector<16x32xf32> -> vector<16x32xf32>
    %38 = arith.addf %33, %37 : vector<16x32xf32>
    %c0_44 = arith.constant 0 : index
    %c0_45 = arith.constant 0 : index
    %39 = vector.load %arg3[%c0_44, %c0_45] : memref<1x32xf32, #tpu.memory_space<vmem>>, vector<1x32xf32>
    %40 = vector.broadcast %39 : vector<1x32xf32> to vector<16x32xf32>
    %41 = arith.addf %38, %40 : vector<16x32xf32>
    %cst_46 = arith.constant 0.000000e+00 : f32
    %42 = vector.broadcast %cst_46 : f32 to vector<16x32xf32>
    %43 = arith.maximumf %41, %42 : vector<16x32xf32>
    %c1_47 = arith.constant 1 : index
    %c0_48 = arith.constant 0 : index
    %44 = vector.load %arg20[%c1_47, %c0_48] : memref<18x32xf32, #tpu.memory_space<vmem>>, vector<16x32xf32>
    tpu.vector_store %arg20[%c1_47, %c0_48], %43 {strides = array<i32>} : memref<18x32xf32, #tpu.memory_space<vmem>>, vector<16x32xf32>,
    %c0_49 = arith.constant 0 : index
    %c0_50 = arith.constant 0 : index
    %45 = vector.load %arg20[%c0_49, %c0_50] : memref<18x32xf32, #tpu.memory_space<vmem>>, vector<16x32xf32>
    %c0_51 = arith.constant 0 : index
    %c0_52 = arith.constant 0 : index
    %c0_53 = arith.constant 0 : index
    %46 = vector.load %arg4[%c0_51, %c0_52, %c0_53] : memref<3x32x64xf32, #tpu.memory_space<vmem>>, vector<1x32x64xf32>
    %47 = vector.shape_cast %46 : vector<1x32x64xf32> to vector<32x64xf32>
    %cst_54 = arith.constant dense<0.000000e+00> : vector<16x64xf32>
    %48 = tpu.matmul %45, %47, %cst_54 {dimension_numbers = #tpu.dot_dimension_numbers<[1], [0], [0], [1], [0, 0, 1, 1], [], []>} : vector<16x32xf32>, vector<32x64xf32>, vector<16x64xf32> -> vector<16x64xf32>
    %c1_55 = arith.constant 1 : index
    %c0_56 = arith.constant 0 : index
    %49 = vector.load %arg20[%c1_55, %c0_56] : memref<18x32xf32, #tpu.memory_space<vmem>>, vector<16x32xf32>
    %c1_57 = arith.constant 1 : index
    %c0_58 = arith.constant 0 : index
    %c0_59 = arith.constant 0 : index
    %50 = vector.load %arg4[%c1_57, %c0_58, %c0_59] : memref<3x32x64xf32, #tpu.memory_space<vmem>>, vector<1x32x64xf32>
    %51 = vector.shape_cast %50 : vector<1x32x64xf32> to vector<32x64xf32>
    %cst_60 = arith.constant dense<0.000000e+00> : vector<16x64xf32>
    %52 = tpu.matmul %49, %51, %cst_60 {dimension_numbers = #tpu.dot_dimension_numbers<[1], [0], [0], [1], [0, 0, 1, 1], [], []>} : vector<16x32xf32>, vector<32x64xf32>, vector<16x64xf32> -> vector<16x64xf32>
    %53 = arith.addf %48, %52 : vector<16x64xf32>
    %c2_61 = arith.constant 2 : index
    %c0_62 = arith.constant 0 : index
    %54 = vector.load %arg20[%c2_61, %c0_62] : memref<18x32xf32, #tpu.memory_space<vmem>>, vector<16x32xf32>
    %c2_63 = arith.constant 2 : index
    %c0_64 = arith.constant 0 : index
    %c0_65 = arith.constant 0 : index
    %55 = vector.load %arg4[%c2_63, %c0_64, %c0_65] : memref<3x32x64xf32, #tpu.memory_space<vmem>>, vector<1x32x64xf32>
    %56 = vector.shape_cast %55 : vector<1x32x64xf32> to vector<32x64xf32>
    %cst_66 = arith.constant dense<0.000000e+00> : vector<16x64xf32>
    %57 = tpu.matmul %54, %56, %cst_66 {dimension_numbers = #tpu.dot_dimension_numbers<[1], [0], [0], [1], [0, 0, 1, 1], [], []>} : vector<16x32xf32>, vector<32x64xf32>, vector<16x64xf32> -> vector<16x64xf32>
    %58 = arith.addf %53, %57 : vector<16x64xf32>
    %c0_67 = arith.constant 0 : index
    %c0_68 = arith.constant 0 : index
    %59 = vector.load %arg5[%c0_67, %c0_68] : memref<1x64xf32, #tpu.memory_space<vmem>>, vector<1x64xf32>
    %60 = vector.broadcast %59 : vector<1x64xf32> to vector<16x64xf32>
    %61 = arith.addf %58, %60 : vector<16x64xf32>
    %c0_69 = arith.constant 0 : index
    %c0_70 = arith.constant 0 : index
    %c0_71 = arith.constant 0 : index
    %62 = vector.load %arg8[%c0_69, %c0_70, %c0_71] : memref<2x8x16xf32, #tpu.memory_space<vmem>>, vector<1x8x16xf32>
    %63 = vector.shape_cast %62 : vector<1x8x16xf32> to vector<8x16xf32>
    %cst_72 = arith.constant dense<0.000000e+00> : vector<8x64xf32>
    %64 = tpu.matmul %63, %61, %cst_72 {dimension_numbers = #tpu.dot_dimension_numbers<[1], [0], [0], [1], [0, 0, 1, 1], [], []>} : vector<8x16xf32>, vector<16x64xf32>, vector<8x64xf32> -> vector<8x64xf32>
    %c1_73 = arith.constant 1 : index
    %c0_74 = arith.constant 0 : index
    %c0_75 = arith.constant 0 : index
    %65 = vector.load %arg8[%c1_73, %c0_74, %c0_75] : memref<2x8x16xf32, #tpu.memory_space<vmem>>, vector<1x8x16xf32>
    %66 = vector.shape_cast %65 : vector<1x8x16xf32> to vector<8x16xf32>
    %cst_76 = arith.constant dense<0.000000e+00> : vector<8x64xf32>
    %67 = tpu.matmul %66, %61, %cst_76 {dimension_numbers = #tpu.dot_dimension_numbers<[1], [0], [0], [1], [0, 0, 1, 1], [], []>} : vector<8x16xf32>, vector<16x64xf32>, vector<8x64xf32> -> vector<8x64xf32>
    %68 = arith.maximumf %64, %67 : vector<8x64xf32>
    %c0_77 = arith.constant 0 : index
    %c0_78 = arith.constant 0 : index
    %c0_79 = arith.constant 0 : index
    %69 = vector.load %arg9[%c0_77, %c0_78, %c0_79] : memref<2x64x32xf32, #tpu.memory_space<vmem>>, vector<1x64x32xf32>
    %70 = vector.shape_cast %69 : vector<1x64x32xf32> to vector<64x32xf32>
    %cst_80 = arith.constant dense<0.000000e+00> : vector<8x32xf32>
    %71 = tpu.matmul %68, %70, %cst_80 {dimension_numbers = #tpu.dot_dimension_numbers<[1], [0], [0], [1], [0, 0, 1, 1], [], []>} : vector<8x64xf32>, vector<64x32xf32>, vector<8x32xf32> -> vector<8x32xf32>
    %c1_81 = arith.constant 1 : index
    %c0_82 = arith.constant 0 : index
    %c0_83 = arith.constant 0 : index
    %72 = vector.load %arg9[%c1_81, %c0_82, %c0_83] : memref<2x64x32xf32, #tpu.memory_space<vmem>>, vector<1x64x32xf32>
    %73 = vector.shape_cast %72 : vector<1x64x32xf32> to vector<64x32xf32>
    %cst_84 = arith.constant dense<0.000000e+00> : vector<8x32xf32>
    %74 = tpu.matmul %68, %73, %cst_84 {dimension_numbers = #tpu.dot_dimension_numbers<[1], [0], [0], [1], [0, 0, 1, 1], [], []>} : vector<8x64xf32>, vector<64x32xf32>, vector<8x32xf32> -> vector<8x32xf32>
    %75 = arith.maximumf %71, %74 : vector<8x32xf32>
    %cst_85 = arith.constant 0.000000e+00 : f32
    %76 = vector.broadcast %cst_85 : f32 to vector<8x32xf32>
    %77 = arith.maximumf %75, %76 : vector<8x32xf32>
    %c1_86 = arith.constant 1 : index
    %c0_87 = arith.constant 0 : index
    %78 = vector.load %arg21[%c1_86, %c0_87] : memref<10x32xf32, #tpu.memory_space<vmem>>, vector<8x32xf32>
    tpu.vector_store %arg21[%c1_86, %c0_87], %77 {strides = array<i32>} : memref<10x32xf32, #tpu.memory_space<vmem>>, vector<8x32xf32>,
    %c0_88 = arith.constant 0 : index
    %c0_89 = arith.constant 0 : index
    %79 = vector.load %arg21[%c0_88, %c0_89] : memref<10x32xf32, #tpu.memory_space<vmem>>, vector<8x32xf32>
    %c0_90 = arith.constant 0 : index
    %c0_91 = arith.constant 0 : index
    %c0_92 = arith.constant 0 : index
    %80 = vector.load %arg6[%c0_90, %c0_91, %c0_92] : memref<3x32x32xf32, #tpu.memory_space<vmem>>, vector<1x32x32xf32>
    %81 = vector.shape_cast %80 : vector<1x32x32xf32> to vector<32x32xf32>
    %cst_93 = arith.constant dense<0.000000e+00> : vector<8x32xf32>
    %82 = tpu.matmul %79, %81, %cst_93 {dimension_numbers = #tpu.dot_dimension_numbers<[1], [0], [0], [1], [0, 0, 1, 1], [], []>} : vector<8x32xf32>, vector<32x32xf32>, vector<8x32xf32> -> vector<8x32xf32>
    %c1_94 = arith.constant 1 : index
    %c0_95 = arith.constant 0 : index
    %83 = vector.load %arg21[%c1_94, %c0_95] : memref<10x32xf32, #tpu.memory_space<vmem>>, vector<8x32xf32>
    %c1_96 = arith.constant 1 : index
    %c0_97 = arith.constant 0 : index
    %c0_98 = arith.constant 0 : index
    %84 = vector.load %arg6[%c1_96, %c0_97, %c0_98] : memref<3x32x32xf32, #tpu.memory_space<vmem>>, vector<1x32x32xf32>
    %85 = vector.shape_cast %84 : vector<1x32x32xf32> to vector<32x32xf32>
    %cst_99 = arith.constant dense<0.000000e+00> : vector<8x32xf32>
    %86 = tpu.matmul %83, %85, %cst_99 {dimension_numbers = #tpu.dot_dimension_numbers<[1], [0], [0], [1], [0, 0, 1, 1], [], []>} : vector<8x32xf32>, vector<32x32xf32>, vector<8x32xf32> -> vector<8x32xf32>
    %87 = arith.addf %82, %86 : vector<8x32xf32>
    %c2_100 = arith.constant 2 : index
    %c0_101 = arith.constant 0 : index
    %88 = vector.load %arg21[%c2_100, %c0_101] : memref<10x32xf32, #tpu.memory_space<vmem>>, vector<8x32xf32>
    %c2_102 = arith.constant 2 : index
    %c0_103 = arith.constant 0 : index
    %c0_104 = arith.constant 0 : index
    %89 = vector.load %arg6[%c2_102, %c0_103, %c0_104] : memref<3x32x32xf32, #tpu.memory_space<vmem>>, vector<1x32x32xf32>
    %90 = vector.shape_cast %89 : vector<1x32x32xf32> to vector<32x32xf32>
    %cst_105 = arith.constant dense<0.000000e+00> : vector<8x32xf32>
    %91 = tpu.matmul %88, %90, %cst_105 {dimension_numbers = #tpu.dot_dimension_numbers<[1], [0], [0], [1], [0, 0, 1, 1], [], []>} : vector<8x32xf32>, vector<32x32xf32>, vector<8x32xf32> -> vector<8x32xf32>
    %92 = arith.addf %87, %91 : vector<8x32xf32>
    %c0_106 = arith.constant 0 : index
    %c0_107 = arith.constant 0 : index
    %93 = vector.load %arg7[%c0_106, %c0_107] : memref<1x32xf32, #tpu.memory_space<vmem>>, vector<1x32xf32>
    %94 = vector.broadcast %93 : vector<1x32xf32> to vector<8x32xf32>
    %95 = arith.addf %92, %94 : vector<8x32xf32>
    %c0_108 = arith.constant 0 : index
    %c0_109 = arith.constant 0 : index
    %c0_110 = arith.constant 0 : index
    %96 = vector.load %arg10[%c0_108, %c0_109, %c0_110] : memref<2x4x8xf32, #tpu.memory_space<vmem>>, vector<1x4x8xf32>
    %97 = vector.shape_cast %96 : vector<1x4x8xf32> to vector<4x8xf32>
    %cst_111 = arith.constant dense<0.000000e+00> : vector<4x32xf32>
    %98 = tpu.matmul %97, %95, %cst_111 {dimension_numbers = #tpu.dot_dimension_numbers<[1], [0], [0], [1], [0, 0, 1, 1], [], []>} : vector<4x8xf32>, vector<8x32xf32>, vector<4x32xf32> -> vector<4x32xf32>
    %c1_112 = arith.constant 1 : index
    %c0_113 = arith.constant 0 : index
    %c0_114 = arith.constant 0 : index
    %99 = vector.load %arg10[%c1_112, %c0_113, %c0_114] : memref<2x4x8xf32, #tpu.memory_space<vmem>>, vector<1x4x8xf32>
    %100 = vector.shape_cast %99 : vector<1x4x8xf32> to vector<4x8xf32>
    %cst_115 = arith.constant dense<0.000000e+00> : vector<4x32xf32>
    %101 = tpu.matmul %100, %95, %cst_115 {dimension_numbers = #tpu.dot_dimension_numbers<[1], [0], [0], [1], [0, 0, 1, 1], [], []>} : vector<4x8xf32>, vector<8x32xf32>, vector<4x32xf32> -> vector<4x32xf32>
    %102 = arith.maximumf %98, %101 : vector<4x32xf32>
    %c0_116 = arith.constant 0 : index
    %c0_117 = arith.constant 0 : index
    %c0_118 = arith.constant 0 : index
    %103 = vector.load %arg11[%c0_116, %c0_117, %c0_118] : memref<2x32x16xf32, #tpu.memory_space<vmem>>, vector<1x32x16xf32>
    %104 = vector.shape_cast %103 : vector<1x32x16xf32> to vector<32x16xf32>
    %cst_119 = arith.constant dense<0.000000e+00> : vector<4x16xf32>
    %105 = tpu.matmul %102, %104, %cst_119 {dimension_numbers = #tpu.dot_dimension_numbers<[1], [0], [0], [1], [0, 0, 1, 1], [], []>} : vector<4x32xf32>, vector<32x16xf32>, vector<4x16xf32> -> vector<4x16xf32>
    %c1_120 = arith.constant 1 : index
    %c0_121 = arith.constant 0 : index
    %c0_122 = arith.constant 0 : index
    %106 = vector.load %arg11[%c1_120, %c0_121, %c0_122] : memref<2x32x16xf32, #tpu.memory_space<vmem>>, vector<1x32x16xf32>
    %107 = vector.shape_cast %106 : vector<1x32x16xf32> to vector<32x16xf32>
    %cst_123 = arith.constant dense<0.000000e+00> : vector<4x16xf32>
    %108 = tpu.matmul %102, %107, %cst_123 {dimension_numbers = #tpu.dot_dimension_numbers<[1], [0], [0], [1], [0, 0, 1, 1], [], []>} : vector<4x32xf32>, vector<32x16xf32>, vector<4x16xf32> -> vector<4x16xf32>
    %109 = arith.maximumf %105, %108 : vector<4x16xf32>
    %cst_124 = arith.constant 0.000000e+00 : f32
    %110 = vector.broadcast %cst_124 : f32 to vector<4x16xf32>
    %111 = arith.maximumf %109, %110 : vector<4x16xf32>
    %112 = vector.extract_strided_slice %111 {offsets = [0, 0], sizes = [1, 16], strides = [1, 1]} : vector<4x16xf32> to vector<1x16xf32>
    %c0_125 = arith.constant 0 : index
    %c0_126 = arith.constant 0 : index
    %c0_127 = arith.constant 0 : index
    %113 = vector.load %arg22[%c0_125, %c0_126, %c0_127] : memref<4x1x16xf32, #tpu.memory_space<vmem>>, vector<1x1x16xf32>
    %114 = vector.shape_cast %113 : vector<1x1x16xf32> to vector<1x16xf32>
    %115 = vector.shape_cast %112 : vector<1x16xf32> to vector<1x1x16xf32>
    tpu.vector_store %arg22[%c0_125, %c0_126, %c0_127], %115 {strides = array<i32>} : memref<4x1x16xf32, #tpu.memory_space<vmem>>, vector<1x1x16xf32>,
    %116 = vector.extract_strided_slice %111 {offsets = [1, 0], sizes = [1, 16], strides = [1, 1]} : vector<4x16xf32> to vector<1x16xf32>
    %c1_128 = arith.constant 1 : index
    %c0_129 = arith.constant 0 : index
    %c0_130 = arith.constant 0 : index
    %117 = vector.load %arg22[%c1_128, %c0_129, %c0_130] : memref<4x1x16xf32, #tpu.memory_space<vmem>>, vector<1x1x16xf32>
    %118 = vector.shape_cast %117 : vector<1x1x16xf32> to vector<1x16xf32>
    %119 = vector.shape_cast %116 : vector<1x16xf32> to vector<1x1x16xf32>
    tpu.vector_store %arg22[%c1_128, %c0_129, %c0_130], %119 {strides = array<i32>} : memref<4x1x16xf32, #tpu.memory_space<vmem>>, vector<1x1x16xf32>,
    %120 = vector.extract_strided_slice %111 {offsets = [2, 0], sizes = [1, 16], strides = [1, 1]} : vector<4x16xf32> to vector<1x16xf32>
    %c2_131 = arith.constant 2 : index
    %c0_132 = arith.constant 0 : index
    %c0_133 = arith.constant 0 : index
    %121 = vector.load %arg22[%c2_131, %c0_132, %c0_133] : memref<4x1x16xf32, #tpu.memory_space<vmem>>, vector<1x1x16xf32>
    %122 = vector.shape_cast %121 : vector<1x1x16xf32> to vector<1x16xf32>
    %123 = vector.shape_cast %120 : vector<1x16xf32> to vector<1x1x16xf32>
    tpu.vector_store %arg22[%c2_131, %c0_132, %c0_133], %123 {strides = array<i32>} : memref<4x1x16xf32, #tpu.memory_space<vmem>>, vector<1x1x16xf32>,
    %124 = vector.extract_strided_slice %111 {offsets = [3, 0], sizes = [1, 16], strides = [1, 1]} : vector<4x16xf32> to vector<1x16xf32>
    %c3_134 = arith.constant 3 : index
    %c0_135 = arith.constant 0 : index
    %c0_136 = arith.constant 0 : index
    %125 = vector.load %arg22[%c3_134, %c0_135, %c0_136] : memref<4x1x16xf32, #tpu.memory_space<vmem>>, vector<1x1x16xf32>
    %126 = vector.shape_cast %125 : vector<1x1x16xf32> to vector<1x16xf32>
    %127 = vector.shape_cast %124 : vector<1x16xf32> to vector<1x1x16xf32>
    tpu.vector_store %arg22[%c3_134, %c0_135, %c0_136], %127 {strides = array<i32>} : memref<4x1x16xf32, #tpu.memory_space<vmem>>, vector<1x1x16xf32>,
    %c0_137 = arith.constant 0 : index
    %c0_138 = arith.constant 0 : index
    %c0_139 = arith.constant 0 : index
    %128 = vector.load %arg22[%c0_137, %c0_138, %c0_139] : memref<4x1x16xf32, #tpu.memory_space<vmem>>, vector<1x1x16xf32>
    %129 = vector.shape_cast %128 : vector<1x1x16xf32> to vector<1x16xf32>
    %c0_140 = arith.constant 0 : index
    %c0_141 = arith.constant 0 : index
    %c0_142 = arith.constant 0 : index
    %130 = vector.load %arg12[%c0_140, %c0_141, %c0_142] : memref<4x16x400xf32, #tpu.memory_space<vmem>>, vector<1x16x400xf32>
    %131 = vector.shape_cast %130 : vector<1x16x400xf32> to vector<16x400xf32>
    %cst_143 = arith.constant dense<0.000000e+00> : vector<1x400xf32>
    %132 = tpu.matmul %129, %131, %cst_143 {dimension_numbers = #tpu.dot_dimension_numbers<[1], [0], [0], [1], [0, 0, 1, 1], [], []>} : vector<1x16xf32>, vector<16x400xf32>, vector<1x400xf32> -> vector<1x400xf32>
    %c1_144 = arith.constant 1 : index
    %c0_145 = arith.constant 0 : index
    %c0_146 = arith.constant 0 : index
    %133 = vector.load %arg22[%c1_144, %c0_145, %c0_146] : memref<4x1x16xf32, #tpu.memory_space<vmem>>, vector<1x1x16xf32>
    %134 = vector.shape_cast %133 : vector<1x1x16xf32> to vector<1x16xf32>
    %c1_147 = arith.constant 1 : index
    %c0_148 = arith.constant 0 : index
    %c0_149 = arith.constant 0 : index
    %135 = vector.load %arg12[%c1_147, %c0_148, %c0_149] : memref<4x16x400xf32, #tpu.memory_space<vmem>>, vector<1x16x400xf32>
    %136 = vector.shape_cast %135 : vector<1x16x400xf32> to vector<16x400xf32>
    %cst_150 = arith.constant dense<0.000000e+00> : vector<1x400xf32>
    %137 = tpu.matmul %134, %136, %cst_150 {dimension_numbers = #tpu.dot_dimension_numbers<[1], [0], [0], [1], [0, 0, 1, 1], [], []>} : vector<1x16xf32>, vector<16x400xf32>, vector<1x400xf32> -> vector<1x400xf32>
    %138 = arith.addf %132, %137 : vector<1x400xf32>
    %c2_151 = arith.constant 2 : index
    %c0_152 = arith.constant 0 : index
    %c0_153 = arith.constant 0 : index
    %139 = vector.load %arg22[%c2_151, %c0_152, %c0_153] : memref<4x1x16xf32, #tpu.memory_space<vmem>>, vector<1x1x16xf32>
    %140 = vector.shape_cast %139 : vector<1x1x16xf32> to vector<1x16xf32>
    %c2_154 = arith.constant 2 : index
    %c0_155 = arith.constant 0 : index
    %c0_156 = arith.constant 0 : index
    %141 = vector.load %arg12[%c2_154, %c0_155, %c0_156] : memref<4x16x400xf32, #tpu.memory_space<vmem>>, vector<1x16x400xf32>
    %142 = vector.shape_cast %141 : vector<1x16x400xf32> to vector<16x400xf32>
    %cst_157 = arith.constant dense<0.000000e+00> : vector<1x400xf32>
    %143 = tpu.matmul %140, %142, %cst_157 {dimension_numbers = #tpu.dot_dimension_numbers<[1], [0], [0], [1], [0, 0, 1, 1], [], []>} : vector<1x16xf32>, vector<16x400xf32>, vector<1x400xf32> -> vector<1x400xf32>
    %c3_158 = arith.constant 3 : index
    %c0_159 = arith.constant 0 : index
    %c0_160 = arith.constant 0 : index
    %144 = vector.load %arg22[%c3_158, %c0_159, %c0_160] : memref<4x1x16xf32, #tpu.memory_space<vmem>>, vector<1x1x16xf32>
    %145 = vector.shape_cast %144 : vector<1x1x16xf32> to vector<1x16xf32>
    %c3_161 = arith.constant 3 : index
    %c0_162 = arith.constant 0 : index
    %c0_163 = arith.constant 0 : index
    %146 = vector.load %arg12[%c3_161, %c0_162, %c0_163] : memref<4x16x400xf32, #tpu.memory_space<vmem>>, vector<1x16x400xf32>
    %147 = vector.shape_cast %146 : vector<1x16x400xf32> to vector<16x400xf32>
    %cst_164 = arith.constant dense<0.000000e+00> : vector<1x400xf32>
    %148 = tpu.matmul %145, %147, %cst_164 {dimension_numbers = #tpu.dot_dimension_numbers<[1], [0], [0], [1], [0, 0, 1, 1], [], []>} : vector<1x16xf32>, vector<16x400xf32>, vector<1x400xf32> -> vector<1x400xf32>
    %149 = arith.addf %143, %148 : vector<1x400xf32>
    %150 = arith.addf %138, %149 : vector<1x400xf32>
    %c0_165 = arith.constant 0 : index
    %c0_166 = arith.constant 0 : index
    %151 = vector.load %arg13[%c0_165, %c0_166] : memref<1x400xf32, #tpu.memory_space<vmem>>, vector<1x400xf32>
    %152 = arith.addf %150, %151 : vector<1x400xf32>
    %cst_167 = arith.constant 0.000000e+00 : f32
    %153 = vector.broadcast %cst_167 : f32 to vector<1x400xf32>
    %154 = arith.maximumf %152, %153 : vector<1x400xf32>
    %c0_168 = arith.constant 0 : index
    %c0_169 = arith.constant 0 : index
    %155 = vector.load %arg14[%c0_168, %c0_169] : memref<400x50xf32, #tpu.memory_space<vmem>>, vector<400x50xf32>
    %cst_170 = arith.constant dense<0.000000e+00> : vector<1x50xf32>
    %156 = tpu.matmul %154, %155, %cst_170 {dimension_numbers = #tpu.dot_dimension_numbers<[1], [0], [0], [1], [0, 0, 1, 1], [], []>} : vector<1x400xf32>, vector<400x50xf32>, vector<1x50xf32> -> vector<1x50xf32>
    %c0_171 = arith.constant 0 : index
    %c0_172 = arith.constant 0 : index
    %157 = vector.load %arg15[%c0_171, %c0_172] : memref<1x50xf32, #tpu.memory_space<vmem>>, vector<1x50xf32>
    %158 = arith.addf %156, %157 : vector<1x50xf32>
    %cst_173 = arith.constant 0.000000e+00 : f32
    %159 = vector.broadcast %cst_173 : f32 to vector<1x50xf32>
    %160 = arith.maximumf %158, %159 : vector<1x50xf32>
    %c0_174 = arith.constant 0 : index
    %c0_175 = arith.constant 0 : index
    %161 = vector.load %arg16[%c0_174, %c0_175] : memref<50x2xf32, #tpu.memory_space<vmem>>, vector<50x2xf32>
    %cst_176 = arith.constant dense<0.000000e+00> : vector<1x2xf32>
    %162 = tpu.matmul %160, %161, %cst_176 {dimension_numbers = #tpu.dot_dimension_numbers<[1], [0], [0], [1], [0, 0, 1, 1], [], []>} : vector<1x50xf32>, vector<50x2xf32>, vector<1x2xf32> -> vector<1x2xf32>
    %c0_177 = arith.constant 0 : index
    %c0_178 = arith.constant 0 : index
    %163 = vector.load %arg17[%c0_177, %c0_178] : memref<1x2xf32, #tpu.memory_space<vmem>>, vector<1x2xf32>
    %164 = arith.addf %162, %163 : vector<1x2xf32>
    %c0_179 = arith.constant 0 : index
    %c0_180 = arith.constant 0 : index
    %c0_181 = arith.constant 0 : index
    %165 = vector.load %arg18[%c0_179, %c0_180, %c0_181] : memref<1x1x64xf32, #tpu.memory_space<vmem>>, vector<1x1x50xf32>
    %166 = vector.shape_cast %165 : vector<1x1x50xf32> to vector<1x50xf32>
    %167 = vector.shape_cast %160 : vector<1x50xf32> to vector<1x1x50xf32>
    tpu.vector_store %arg18[%c0_179, %c0_180, %c0_181], %167 {strides = array<i32>} : memref<1x1x64xf32, #tpu.memory_space<vmem>>, vector<1x1x50xf32>,
    %c0_182 = arith.constant 0 : index
    %c0_183 = arith.constant 0 : index
    %c50 = arith.constant 50 : index
    %168 = vector.load %arg18[%c0_182, %c0_183, %c50] : memref<1x1x64xf32, #tpu.memory_space<vmem>>, vector<1x1x2xf32>
    %169 = vector.shape_cast %168 : vector<1x1x2xf32> to vector<1x2xf32>
    %170 = vector.shape_cast %164 : vector<1x2xf32> to vector<1x1x2xf32>
    tpu.vector_store %arg18[%c0_182, %c0_183, %c50], %170 {strides = array<i32>} : memref<1x1x64xf32, #tpu.memory_space<vmem>>, vector<1x1x2xf32>,
    %cst_184 = arith.constant 0.000000e+00 : f32
    %171 = vector.broadcast %cst_184 : f32 to vector<1x12xf32>
    %c0_185 = arith.constant 0 : index
    %c0_186 = arith.constant 0 : index
    %c52 = arith.constant 52 : index
    %172 = vector.load %arg18[%c0_185, %c0_186, %c52] : memref<1x1x64xf32, #tpu.memory_space<vmem>>, vector<1x1x12xf32>
    %173 = vector.shape_cast %172 : vector<1x1x12xf32> to vector<1x12xf32>
    %174 = vector.shape_cast %171 : vector<1x12xf32> to vector<1x1x12xf32>
    tpu.vector_store %arg18[%c0_185, %c0_186, %c52], %174 {strides = array<i32>} : memref<1x1x64xf32, #tpu.memory_space<vmem>>, vector<1x1x12xf32>,
    return
  }
  func.func @transform_0(%arg0: i32) -> (i32, i32, i32) {
    %c0_i32 = arith.constant 0 : i32
    %c0_i32_0 = arith.constant 0 : i32
    %c0_i32_1 = arith.constant 0 : i32
    return %arg0, %c0_i32, %c0_i32_0 : i32, i32, i32
  }
  func.func @transform_1(%arg0: i32) -> (i32, i32, i32) {
    %c0_i32 = arith.constant 0 : i32
    %c0_i32_0 = arith.constant 0 : i32
    %c0_i32_1 = arith.constant 0 : i32
    %c0_i32_2 = arith.constant 0 : i32
    return %c0_i32, %c0_i32_0, %c0_i32_1 : i32, i32, i32
  }
  func.func @transform_2(%arg0: i32) -> (i32, i32) {
    %c0_i32 = arith.constant 0 : i32
    %c0_i32_0 = arith.constant 0 : i32
    %c0_i32_1 = arith.constant 0 : i32
    return %c0_i32, %c0_i32_0 : i32, i32
  }
  func.func @transform_3(%arg0: i32) -> (i32, i32, i32) {
    %c0_i32 = arith.constant 0 : i32
    %c0_i32_0 = arith.constant 0 : i32
    %c0_i32_1 = arith.constant 0 : i32
    %c0_i32_2 = arith.constant 0 : i32
    return %c0_i32, %c0_i32_0, %c0_i32_1 : i32, i32, i32
  }
  func.func @transform_4(%arg0: i32) -> (i32, i32) {
    %c0_i32 = arith.constant 0 : i32
    %c0_i32_0 = arith.constant 0 : i32
    %c0_i32_1 = arith.constant 0 : i32
    return %c0_i32, %c0_i32_0 : i32, i32
  }
  func.func @transform_5(%arg0: i32) -> (i32, i32, i32) {
    %c0_i32 = arith.constant 0 : i32
    %c0_i32_0 = arith.constant 0 : i32
    %c0_i32_1 = arith.constant 0 : i32
    %c0_i32_2 = arith.constant 0 : i32
    return %c0_i32, %c0_i32_0, %c0_i32_1 : i32, i32, i32
  }
  func.func @transform_6(%arg0: i32) -> (i32, i32) {
    %c0_i32 = arith.constant 0 : i32
    %c0_i32_0 = arith.constant 0 : i32
    %c0_i32_1 = arith.constant 0 : i32
    return %c0_i32, %c0_i32_0 : i32, i32
  }
  func.func @transform_7(%arg0: i32) -> (i32, i32, i32) {
    %c0_i32 = arith.constant 0 : i32
    %c0_i32_0 = arith.constant 0 : i32
    %c0_i32_1 = arith.constant 0 : i32
    %c0_i32_2 = arith.constant 0 : i32
    return %c0_i32, %c0_i32_0, %c0_i32_1 : i32, i32, i32
  }
  func.func @transform_8(%arg0: i32) -> (i32, i32, i32) {
    %c0_i32 = arith.constant 0 : i32
    %c0_i32_0 = arith.constant 0 : i32
    %c0_i32_1 = arith.constant 0 : i32
    %c0_i32_2 = arith.constant 0 : i32
    return %c0_i32, %c0_i32_0, %c0_i32_1 : i32, i32, i32
  }
  func.func @transform_9(%arg0: i32) -> (i32, i32, i32) {
    %c0_i32 = arith.constant 0 : i32
    %c0_i32_0 = arith.constant 0 : i32
    %c0_i32_1 = arith.constant 0 : i32
    %c0_i32_2 = arith.constant 0 : i32
    return %c0_i32, %c0_i32_0, %c0_i32_1 : i32, i32, i32
  }
  func.func @transform_10(%arg0: i32) -> (i32, i32, i32) {
    %c0_i32 = arith.constant 0 : i32
    %c0_i32_0 = arith.constant 0 : i32
    %c0_i32_1 = arith.constant 0 : i32
    %c0_i32_2 = arith.constant 0 : i32
    return %c0_i32, %c0_i32_0, %c0_i32_1 : i32, i32, i32
  }
  func.func @transform_11(%arg0: i32) -> (i32, i32, i32) {
    %c0_i32 = arith.constant 0 : i32
    %c0_i32_0 = arith.constant 0 : i32
    %c0_i32_1 = arith.constant 0 : i32
    %c0_i32_2 = arith.constant 0 : i32
    return %c0_i32, %c0_i32_0, %c0_i32_1 : i32, i32, i32
  }
  func.func @transform_12(%arg0: i32) -> (i32, i32) {
    %c0_i32 = arith.constant 0 : i32
    %c0_i32_0 = arith.constant 0 : i32
    %c0_i32_1 = arith.constant 0 : i32
    return %c0_i32, %c0_i32_0 : i32, i32
  }
  func.func @transform_13(%arg0: i32) -> (i32, i32) {
    %c0_i32 = arith.constant 0 : i32
    %c0_i32_0 = arith.constant 0 : i32
    %c0_i32_1 = arith.constant 0 : i32
    return %c0_i32, %c0_i32_0 : i32, i32
  }
  func.func @transform_14(%arg0: i32) -> (i32, i32) {
    %c0_i32 = arith.constant 0 : i32
    %c0_i32_0 = arith.constant 0 : i32
    %c0_i32_1 = arith.constant 0 : i32
    return %c0_i32, %c0_i32_0 : i32, i32
  }
  func.func @transform_15(%arg0: i32) -> (i32, i32) {
    %c0_i32 = arith.constant 0 : i32
    %c0_i32_0 = arith.constant 0 : i32
    %c0_i32_1 = arith.constant 0 : i32
    return %c0_i32, %c0_i32_0 : i32, i32
  }
  func.func @transform_16(%arg0: i32) -> (i32, i32) {
    %c0_i32 = arith.constant 0 : i32
    %c0_i32_0 = arith.constant 0 : i32
    %c0_i32_1 = arith.constant 0 : i32
    return %c0_i32, %c0_i32_0 : i32, i32
  }
  func.func @transform_17(%arg0: i32) -> (i32, i32, i32) {
    %c0_i32 = arith.constant 0 : i32
    %c0_i32_0 = arith.constant 0 : i32
    %c0_i32_1 = arith.constant 0 : i32
    return %arg0, %c0_i32, %c0_i32_0 : i32, i32, i32
  }
}

</mosaic_0001>

<bundles_post_ra>
// kernel: network_forward.1
= control target key start
LH: loop header
LB: loop body
LE: loop exit
PB: predicated region body
PF: predicated region fallthrough
CT: control target
= control target key end

     0   :  { %s4003_s24 = smov 0   ;;  %s4844_s0 = inlined_call_operand.vmem [shape: f32[2,16,128], index: 0, kind: input, shape index: {}]   ;;  %s4845_s1 = inlined_call_operand.vmem [shape: f32[5,128,32], index: 1, kind: input, shape index: {}]   ;;  %s4846_s2 = inlined_call_operand.vmem [shape: f32[1,32], index: 2, kind: input, shape index: {}]   ;;  %s4847_s3 = inlined_call_operand.vmem [shape: f32[3,32,64], index: 3, kind: input, shape index: {}]   ;;  %s4848_s4 = inlined_call_operand.vmem [shape: f32[1,64], index: 4, kind: input, shape index: {}]   ;;  %s4849_s5 = inlined_call_operand.vmem [shape: f32[3,32,32], index: 5, kind: input, shape index: {}]   ;;  %s4850_s6 = inlined_call_operand.vmem [shape: f32[1,32], index: 6, kind: input, shape index: {}]   ;;  %s4851_s7 = inlined_call_operand.vmem [shape: f32[2,8,16], index: 7, kind: input, shape index: {}]   ;;  %s4852_s8 = inlined_call_operand.vmem [shape: f32[2,64,32], index: 8, kind: input, shape index: {}]   ;;  %s4853_s9 = inlined_call_operand.vmem [shape: f32[2,4,8], index: 9, kind: input, shape index: {}]   ;;  %s4854_s10 = inlined_call_operand.vmem [shape: f32[2,32,16], index: 10, kind: input, shape index: {}]   ;;  %s4855_s11 = inlined_call_operand.vmem [shape: f32[4,16,400], index: 11, kind: input, shape index: {}]   ;;  %s4856_s12 = inlined_call_operand.vmem [shape: f32[1,400], index: 12, kind: input, shape index: {}]   ;;  %s4857_s13 = inlined_call_operand.vmem [shape: f32[400,50], index: 13, kind: input, shape index: {}]   ;;  %s4858_s14 = inlined_call_operand.vmem [shape: f32[1,50], index: 14, kind: input, shape index: {}]   ;;  %s4859_s15 = inlined_call_operand.vmem [shape: f32[50,2], index: 15, kind: input, shape index: {}]   ;;  %s4860_s16 = inlined_call_operand.vmem [shape: f32[1,2], index: 16, kind: input, shape index: {}]   ;;  %s4861_s17 = inlined_call_operand.vmem [shape: f32[2,1,64], index: 17, kind: output, shape index: {}]  }
   0x1   :  { %4864 = sst [smem:[#allocation7_spill]] %s4844_s0 }
   0x2   :  { %4865 = sst [smem:[#allocation8_spill]] %s4845_s1 }
   0x3 LB: > { %4866 = sst [smem:[#allocation6_spill]] %s3908_s24  ;;  %s3186_s25 = sadd.s32 4294967295, %s3908_s24   ;;  %s3908_s24 = sphi %s4003_s24, %s27_s24  }
   0x4   : > { %p3190_p0 = scmp.ge.s32.totalorder %s3908_s24, 1  ;;  %p487_p1 = scmp.lt.s32.totalorder %s3908_s24, 3 }
   0x6   : > { %p488_p2 = pnand %p3190_p0, %p487_p1 }
   0x7   : > { %s4867_s28 = sld [smem:[#allocation8_spill]] (!%p488_p2)  ;;  %p537_p3 = scmp.lt.s32.totalorder (!%p488_p2), %s3186_s25, 1 }
   0x8   : > { %491 = sbr.rel (%p488_p2) target bundleno = 2286 (0x8ee), region = 88  ;;  %s4868_s23 = sld [smem:[#allocation7_spill]] (!%p488_p2) }
   0x9   : > { %s3912_s24 = smov (!%p488_p2), 50  }
   0xd   : > { %v3208_v0 = vld [vmem:[%s4867_s28 + $0xf8] sm:$0xff]  ;;  %v3207_v2 = vld [vmem:[%s4867_s28 + $0xf0] sm:$0xff]  ;;  %v3910_v4 = vmov 0.0   ;;  %v3206_v5 = vld [vmem:[%s4867_s28 + $0xe8] sm:$0xff]  ;;  %s4871_s25 = smov (!%p537_p3, %s3186_s25), 1  ;;  %vm547_vm0 = vcmask 253952  }
   0xe   : > { %v573_v1 = vld [vmem:[%s4867_s28 + $0x78] sm:$0xff]  ;;  %3549 = vmatprep.subr.mxu0 %v3208_v0  ;;  %v572_v3 = vld [vmem:[%s4867_s28 + $0x70] sm:$0xff]  ;;  %545 = vst [vmem:[#allocation2] sm:$0x3] %v3910_v4  ;;  %546 = vst [vmem:[#allocation2 + $0x12] sm:$0x3] %v3910_v4  ;;  %s544_s19 = scalar_lea.vmem %s4861_s17, %s4871_s25 }
   0xf   : > { %3584 = vmatprep.subr.mxu1 %v573_v1  ;;  %3550 = vmatpush3.msra.mxu0 %v3208_v0  ;;  %v571_v6 = vld [vmem:[%s4867_s28 + $0x68] sm:$0xff]  ;;  %v3205_v7 = vld [vmem:[%s4867_s28 + $0xe0] sm:$0xff]  ;;  %s3344_s30 = sshll.u32 %s4871_s25, 4  ;;  %v3204_v9 = vld [vmem:[%s4867_s28 + $0xd8] sm:$0xff]  ;;  %548 = vst.msk [vmem:[#allocation3] sm:$0x1] %vm547_vm0, %v3910_v4 }
  0x10   : > { %3585 = vmatpush3.msra.mxu1 %v573_v1  ;;  %3551 = vmatprep.subr.mxu0 %v3207_v2  ;;  %v570_v8 = vld [vmem:[%s4867_s28 + $0x60] sm:$0xff]  ;;  %v569_v10 = vld [vmem:[%s4867_s28 + $0x58] sm:$0xff]  ;;  %s541_s26 = scalar_lea.vmem %s4868_s23, %s3344_s30  ;;  %v3203_v11 = vld [vmem:[%s4867_s28 + $0xd0] sm:$0xff]  ;;  %549 = vst.msk [vmem:[#allocation3 + $0x11] sm:$0x1] %vm547_vm0, %v3910_v4  ;;  %vm1042_vm1 = vcmask 261120  }
  0x11   : > { %3586 = vmatprep.subr.mxu1 %v572_v3  ;;  %3552 = vmatpush3.msra.mxu0 %v3207_v2  ;;  %v568_v12 = vld [vmem:[%s4867_s28 + $0x50] sm:$0xff]  ;;  %v3202_v13 = vld [vmem:[%s4867_s28 + $0xc8] sm:$0xff]  ;;  %v4061_v15 = vld [vmem:[%s541_s26] sm:$0xff]  ;;  %550 = vst.msk [vmem:[#allocation4] sm:$0x1] %vm547_vm0, %v3910_v4  ;;  %vm3911_vm2 = vmmov 0  }
  0x12   : > { %3587 = vmatpush3.msra.mxu1 %v572_v3  ;;  %3553 = vmatprep.subr.mxu0 %v3206_v5  ;;  %v567_v14 = vld [vmem:[%s4867_s28 + $0x48] sm:$0xff]  ;;  %554 = vst [vmem:[#allocation2 + $0x2] sm:$0xff] %v4061_v15  ;;  %v3201_v17 = vld [vmem:[%s4867_s28 + $0xc0] sm:$0xff]  ;;  %v3200_v19 = vld [vmem:[%s4867_s28 + $0xb8] sm:$0xff]  ;;  %vm1320_vm3 = vcmask 130048   ;;  %vm1478_vm4 = vcmask 523264  }
  0x13   : > { %3588 = vmatprep.subr.mxu1 %v571_v6  ;;  %3554 = vmatpush3.msra.mxu0 %v3206_v5  ;;  %v4064_v16 = vld [vmem:[%s541_s26 + $0x8] sm:$0xff]  ;;  %v566_v18 = vld [vmem:[%s4867_s28 + $0x40] sm:$0xff]  ;;  %v565_v20 = vld [vmem:[%s4867_s28 + $0x38] sm:$0xff]  ;;  %551 = vst.msk [vmem:[#allocation4 + $0x9] sm:$0x1] %vm547_vm0, %v3910_v4  ;;  %vm1880_vm5 = vcmask 64512  }
  0x14   : > { %3589 = vmatpush3.msra.mxu1 %v571_v6  ;;  %3555 = vmatprep.subr.mxu0 %v3205_v7  ;;  %555 = vst [vmem:[#allocation2 + $0xa] sm:$0xff] %v4064_v16  ;;  %v3199_v21 = vld [vmem:[%s4867_s28 + $0xb0] sm:$0xff]  ;;  %v3198_v23 = vld [vmem:[%s4867_s28 + $0xa8] sm:$0xff]  ;;  %v3197_v25 = vld [vmem:[%s4867_s28 + $0xa0] sm:$0xff]  ;;  %vm2184_vm6 = vcmask 122880   ;;  %vm2187_vm7 = vcmask 123905  }
  0x15   : > { %3590 = vmatprep.subr.mxu1 %v570_v8  ;;  %3556 = vmatpush3.msra.mxu0 %v3205_v7  ;;  %v564_v22 = vld [vmem:[%s4867_s28 + $0x30] sm:$0xff]  ;;  %v563_v24 = vld [vmem:[%s4867_s28 + $0x28] sm:$0xff]  ;;  %v562_v26 = vld [vmem:[%s4867_s28 + $0x20] sm:$0xff]  ;;  %vm2190_vm8 = vcmask 124930   ;;  %vm2193_vm9 = vcmask 125955   ;;  %vm3055_vm10 = vcmask 1041408  }
  0x16   : > { %3591 = vmatpush3.msra.mxu1 %v570_v8  ;;  %3557 = vmatprep.subr.mxu0 %v3204_v9  ;;  %v3196_v27 = vld [vmem:[%s4867_s28 + $0x98] sm:$0xff]  ;;  %v3195_v29 = vld [vmem:[%s4867_s28 + $0x90] sm:$0xff]  ;;  %v3194_v31 = vld [vmem:[%s4867_s28 + $0x88] sm:$0xff]  ;;  %vm3129_vm11 = vcmask 401408   ;;  %vm3051_vm12 = vcmask 408576   ;;  %vm3135_vm13 = vcmask 418192  }
  0x17   : > { %3592 = vmatprep.subr.mxu1 %v569_v10  ;;  %3558 = vmatpush3.msra.mxu0 %v3204_v9  ;;  %v561_v28 = vld [vmem:[%s4867_s28 + $0x18] sm:$0xff]  ;;  %v560_v30 = vld [vmem:[%s4867_s28 + $0x10] sm:$0xff]  ;;  %v559_v32 = vld [vmem:[%s4867_s28 + $0x8] sm:$0xff]  ;;  %vm3137_vm14 = vcmask 516512  }
  0x18   : > { %3593 = vmatpush3.msra.mxu1 %v569_v10  ;;  %3559 = vmatprep.subr.mxu0 %v3203_v11  ;;  %v3193_v33 = vld [vmem:[%s4867_s28 + $0x80] sm:$0xff]  ;;  %v3224_v39 = vld [vmem:[%s4867_s28 + $0x178] sm:$0xff]  ;;  %v3223_v41 = vld [vmem:[%s4867_s28 + $0x170] sm:$0xff] }
  0x19   : > { %3594 = vmatprep.subr.mxu1 %v568_v12  ;;  %3560 = vmatpush3.msra.mxu0 %v3203_v11  ;;  %v558_v34 = vld [vmem:[%s4867_s28] sm:$0xff]  ;;  %v3240_v40 = vld [vmem:[%s4867_s28 + $0x1f8] sm:$0xff]  ;;  %v3239_v42 = vld [vmem:[%s4867_s28 + $0x1f0] sm:$0xff] }
  0x1a   : > { %3595 = vmatpush3.msra.mxu1 %v568_v12  ;;  %3561 = vmatprep.subr.mxu0 %v3202_v13  ;;  %v574_v35 = vld [vmem:[#allocation2 + $0x1] sm:$0xff]  ;;  %v3220_v47 = vld [vmem:[%s4867_s28 + $0x158] sm:$0xff]  ;;  %v3219_v49 = vld [vmem:[%s4867_s28 + $0x150] sm:$0xff] }
  0x1b   : > { %3596 = vmatprep.subr.mxu1 %v567_v14  ;;  %3562 = vmatpush3.msra.mxu0 %v3202_v13  ;;  %v556_v36 = vld [vmem:[#allocation2] sm:$0xff]  ;;  %v575_v37 = vld [vmem:[#allocation2 + $0x9] sm:$0xff]  ;;  %v3236_v48 = vld [vmem:[%s4867_s28 + $0x1d8] sm:$0xff] }
  0x1c   : > { %3597 = vmatpush3.msra.mxu1 %v567_v14  ;;  %3563 = vmatprep.subr.mxu0 %v3201_v17  ;;  %v557_v38 = vld [vmem:[#allocation2 + $0x8] sm:$0xff]  ;;  %v3221_v45 = vld [vmem:[%s4867_s28 + $0x160] sm:$0xff]  ;;  %v3235_v50 = vld [vmem:[%s4867_s28 + $0x1d0] sm:$0xff] }
  0x1d   : > { %3598 = vmatprep.subr.mxu1 %v566_v18  ;;  %3564 = vmatpush3.msra.mxu0 %v3201_v17  ;;  %v3222_v43 = vld [vmem:[%s4867_s28 + $0x168] sm:$0xff]  ;;  %v3237_v46 = vld [vmem:[%s4867_s28 + $0x1e0] sm:$0xff]  ;;  %v3216_v55 = vld [vmem:[%s4867_s28 + $0x138] sm:$0xff] }
  0x1e   : > { %3599 = vmatpush3.msra.mxu1 %v566_v18  ;;  %3565 = vmatprep.subr.mxu0 %v3200_v19  ;;  %v3238_v44 = vld [vmem:[%s4867_s28 + $0x1e8] sm:$0xff]  ;;  %v3217_v53 = vld [vmem:[%s4867_s28 + $0x140] sm:$0xff]  ;;  %v3232_v56 = vld [vmem:[%s4867_s28 + $0x1b8] sm:$0xff] }
  0x1f   : > { %3600 = vmatprep.subr.mxu1 %v565_v20  ;;  %3566 = vmatpush3.msra.mxu0 %v3200_v19  ;;  %v3218_v51 = vld [vmem:[%s4867_s28 + $0x148] sm:$0xff]  ;;  %v3233_v54 = vld [vmem:[%s4867_s28 + $0x1c0] sm:$0xff]  ;;  %v3215_v57 = vld [vmem:[%s4867_s28 + $0x130] sm:$0xff] }
  0x20   : > { %3601 = vmatpush3.msra.mxu1 %v565_v20  ;;  %3567 = vmatprep.subr.mxu0 %v3199_v21  ;;  %v3234_v52 = vld [vmem:[%s4867_s28 + $0x1c8] sm:$0xff]  ;;  %v3231_v58 = vld [vmem:[%s4867_s28 + $0x1b0] sm:$0xff]  ;;  %v3213_v61 = vld [vmem:[%s4867_s28 + $0x120] sm:$0xff] }
  0x21   : > { %3602 = vmatprep.subr.mxu1 %v564_v22  ;;  %3568 = vmatpush3.msra.mxu0 %v3199_v21  ;;  %v3214_v59 = vld [vmem:[%s4867_s28 + $0x128] sm:$0xff]  ;;  %v3229_v62 = vld [vmem:[%s4867_s28 + $0x1a0] sm:$0xff]  ;;  %v3212_v63 = vld [vmem:[%s4867_s28 + $0x118] sm:$0xff] }
  0x22   : > { %3603 = vmatpush3.msra.mxu1 %v564_v22  ;;  %3569 = vmatprep.subr.mxu0 %v3198_v23  ;;  %v3230_v60 = vld [vmem:[%s4867_s28 + $0x1a8] sm:$0xff]  ;;  %v3228_v0 = vld [vmem:[%s4867_s28 + $0x198] sm:$0xff]  ;;  %v3211_v1 = vld [vmem:[%s4867_s28 + $0x110] sm:$0xff] }
  0x23   : > { %3604 = vmatprep.subr.mxu1 %v563_v24  ;;  %3570 = vmatpush3.msra.mxu0 %v3198_v23  ;;  %v3227_v2 = vld [vmem:[%s4867_s28 + $0x190] sm:$0xff]  ;;  %v3210_v3 = vld [vmem:[%s4867_s28 + $0x108] sm:$0xff]  ;;  %v3209_v6 = vld [vmem:[%s4867_s28 + $0x100] sm:$0xff] }
  0x24   : > { %3605 = vmatpush3.msra.mxu1 %v563_v24  ;;  %3571 = vmatprep.subr.mxu0 %v3197_v25  ;;  %v3226_v5 = vld [vmem:[%s4867_s28 + $0x188] sm:$0xff]  ;;  %v3225_v7 = vld [vmem:[%s4867_s28 + $0x180] sm:$0xff]  ;;  %v3256_v8 = vld [vmem:[%s4867_s28 + $0x278] sm:$0xff] }
  0x25   : > { %3606 = vmatprep.subr.mxu1 %v562_v26  ;;  %3572 = vmatpush3.msra.mxu0 %v3197_v25  ;;  %v839_v9 = vld [vmem:[#allocation2 + $0x3] sm:$0xff]  ;;  %v840_v10 = vld [vmem:[#allocation2 + $0xb] sm:$0xff]  ;;  %v3248_v19 = vld [vmem:[%s4867_s28 + $0x238] sm:$0xff] }
  0x26   : > { %3607 = vmatpush3.msra.mxu1 %v562_v26  ;;  %3573 = vmatprep.subr.mxu0 %v3196_v27  ;;  %v3255_v11 = vld [vmem:[%s4867_s28 + $0x270] sm:$0xff]  ;;  %v935_v12 = vld [vmem:[#allocation2 + $0x4] sm:$0xff]  ;;  %v3244_v23 = vld [vmem:[%s4867_s28 + $0x218] sm:$0xff] }
  0x27   : > { %3608 = vmatprep.subr.mxu1 %v561_v28  ;;  %3574 = vmatpush3.msra.mxu0 %v3196_v27  ;;  %v3254_v13 = vld [vmem:[%s4867_s28 + $0x268] sm:$0xff]  ;;  %v3253_v14 = vld [vmem:[%s4867_s28 + $0x260] sm:$0xff]  ;;  %v3247_v20 = vld [vmem:[%s4867_s28 + $0x230] sm:$0xff] }
  0x28   : > { %3609 = vmatpush3.msra.mxu1 %v561_v28  ;;  %3575 = vmatprep.subr.mxu0 %v3195_v29  ;;  %v3250_v17 = vld [vmem:[%s4867_s28 + $0x248] sm:$0xff]  ;;  %v3249_v18 = vld [vmem:[%s4867_s28 + $0x240] sm:$0xff]  ;;  %v3243_v24 = vld [vmem:[%s4867_s28 + $0x210] sm:$0xff] }
  0x29   : > { %3610 = vmatprep.subr.mxu1 %v560_v30  ;;  %3576 = vmatpush3.msra.mxu0 %v3195_v29  ;;  %v3246_v21 = vld [vmem:[%s4867_s28 + $0x228] sm:$0xff]  ;;  %v3245_v22 = vld [vmem:[%s4867_s28 + $0x220] sm:$0xff]  ;;  %v3261_v28 = vld [vmem:[%s4847_s3 + $0x38] sm:$0xff] }
  0x2a   : > { %3611 = vmatpush3.msra.mxu1 %v560_v30  ;;  %3577 = vmatprep.subr.mxu0 %v3194_v31  ;;  %v3242_v25 = vld [vmem:[%s4867_s28 + $0x208] sm:$0xff]  ;;  %v3241_v26 = vld [vmem:[%s4867_s28 + $0x200] sm:$0xff]  ;;  %v3260_v29 = vld [vmem:[%s4847_s3 + $0x30] sm:$0xff] }
  0x2b   : > { %3612 = vmatprep.subr.mxu1 %v559_v32  ;;  %3578 = vmatpush3.msra.mxu0 %v3194_v31  ;;  %v936_v27 = vld [vmem:[#allocation2 + $0xc] sm:$0xff]  ;;  %v3258_v31 = vld [vmem:[%s4847_s3 + $0x20] sm:$0xff] }
  0x2c   : > { %3613 = vmatpush3.msra.mxu1 %v559_v32  ;;  %3579 = vmatprep.subr.mxu0 %v3193_v33  ;;  %v3259_v30 = vld [vmem:[%s4847_s3 + $0x28] sm:$0xff]  ;;  %v1050_v32 = vld [vmem:[%s4847_s3 + $0x18] sm:$0xff] }
  0x2d   : > { %3614 = vmatprep.subr.mxu1 %v558_v34  ;;  %3580 = vmatpush3.msra.mxu0 %v3193_v33 }
  0x2e   : > { %3581 = vmatprep.mubr.f32.mxu0 %v574_v35  ;;  %3615 = vmatpush3.msra.mxu1 %v558_v34 }
  0x2f   : > { %3616 = vmatprep.mubr.f32.mxu1 %v556_v36  ;;  %3582 = vmatmul.mubr.f32.vlgmr.msra.gmra.mxu0 %v575_v37 }
  0x30   : > { %3617 = vmatmul.mubr.f32.vlgmr.msra.gmra.mxu1 %v557_v38  ;;  %3619 = vmatprep.subr.mxu0 %v3224_v39 }
  0x31   : > { %3654 = vmatprep.subr.mxu1 %v3240_v40  ;;  %3620 = vmatpush3.msra.mxu0 %v3224_v39 }
  0x32   : > { %3655 = vmatpush3.msra.mxu1 %v3240_v40  ;;  %3621 = vmatprep.subr.mxu0 %v3223_v41 }
  0x33   : > { %3656 = vmatprep.subr.mxu1 %v3239_v42  ;;  %3622 = vmatpush3.msra.mxu0 %v3223_v41 }
  0x34   : > { %3657 = vmatpush3.msra.mxu1 %v3239_v42  ;;  %3623 = vmatprep.subr.mxu0 %v3222_v43 }
  0x35   : > { %3658 = vmatprep.subr.mxu1 %v3238_v44  ;;  %3624 = vmatpush3.msra.mxu0 %v3222_v43 }
  0x36   : > { %3659 = vmatpush3.msra.mxu1 %v3238_v44  ;;  %3625 = vmatprep.subr.mxu0 %v3221_v45 }
  0x37   : > { %3660 = vmatprep.subr.mxu1 %v3237_v46  ;;  %3626 = vmatpush3.msra.mxu0 %v3221_v45 }
  0x38   : > { %3661 = vmatpush3.msra.mxu1 %v3237_v46  ;;  %3627 = vmatprep.subr.mxu0 %v3220_v47 }
  0x39   : > { %3662 = vmatprep.subr.mxu1 %v3236_v48  ;;  %3628 = vmatpush3.msra.mxu0 %v3220_v47  ;;  %v3257_v47 = vld [vmem:[%s4846_s2] ss:$0 sm:$0xff] }
  0x3a   : > { %3663 = vmatpush3.msra.mxu1 %v3236_v48  ;;  %3629 = vmatprep.subr.mxu0 %v3219_v49 }
  0x3b   : > { %3664 = vmatprep.subr.mxu1 %v3235_v50  ;;  %3630 = vmatpush3.msra.mxu0 %v3219_v49 }
  0x3c   : > { %3665 = vmatpush3.msra.mxu1 %v3235_v50  ;;  %3631 = vmatprep.subr.mxu0 %v3218_v51 }
  0x3d   : > { %3666 = vmatprep.subr.mxu1 %v3234_v52  ;;  %3632 = vmatpush3.msra.mxu0 %v3218_v51 }
  0x3e   : > { %3667 = vmatpush3.msra.mxu1 %v3234_v52  ;;  %3633 = vmatprep.subr.mxu0 %v3217_v53 }
  0x3f   : > { %3668 = vmatprep.subr.mxu1 %v3233_v54  ;;  %3634 = vmatpush3.msra.mxu0 %v3217_v53 }
  0x40   : > { %3669 = vmatpush3.msra.mxu1 %v3233_v54  ;;  %3635 = vmatprep.subr.mxu0 %v3216_v55 }
  0x41   : > { %3670 = vmatprep.subr.mxu1 %v3232_v56  ;;  %3636 = vmatpush3.msra.mxu0 %v3216_v55 }
  0x42   : > { %3671 = vmatpush3.msra.mxu1 %v3232_v56  ;;  %3637 = vmatprep.subr.mxu0 %v3215_v57 }
  0x43   : > { %3672 = vmatprep.subr.mxu1 %v3231_v58  ;;  %3638 = vmatpush3.msra.mxu0 %v3215_v57 }
  0x44   : > { %3673 = vmatpush3.msra.mxu1 %v3231_v58  ;;  %3639 = vmatprep.subr.mxu0 %v3214_v59  ;;  %v1049_v58 = vld [vmem:[%s4847_s3 + $0x10] sm:$0xff] }
  0x45   : > { %3674 = vmatprep.subr.mxu1 %v3230_v60  ;;  %3640 = vmatpush3.msra.mxu0 %v3214_v59 }
  0x46   : > { %3675 = vmatpush3.msra.mxu1 %v3230_v60  ;;  %3641 = vmatprep.subr.mxu0 %v3213_v61  ;;  %v1048_v60 = vld [vmem:[%s4847_s3 + $0x8] sm:$0xff] }
  0x47   : > { %3676 = vmatprep.subr.mxu1 %v3229_v62  ;;  %3642 = vmatpush3.msra.mxu0 %v3213_v61  ;;  %v1047_v61 = vld [vmem:[%s4847_s3] sm:$0xff] }
  0x48   : > { %3677 = vmatpush3.msra.mxu1 %v3229_v62  ;;  %3643 = vmatprep.subr.mxu0 %v3212_v63  ;;  %v3269_v62 = vld [vmem:[%s4847_s3 + $0x58] sm:$0xff] }
  0x49   : > { %3678 = vmatprep.subr.mxu1 %v3228_v0  ;;  %3644 = vmatpush3.msra.mxu0 %v3212_v63 }
  0x4a   : > { %3679 = vmatpush3.msra.mxu1 %v3228_v0  ;;  %3645 = vmatprep.subr.mxu0 %v3211_v1  ;;  %v3268_v0 = vld [vmem:[%s4847_s3 + $0x50] sm:$0xff] }
  0x4b   : > { %3680 = vmatprep.subr.mxu1 %v3227_v2  ;;  %3646 = vmatpush3.msra.mxu0 %v3211_v1 }
  0x4c   : > { %3681 = vmatpush3.msra.mxu1 %v3227_v2  ;;  %3647 = vmatprep.subr.mxu0 %v3210_v3  ;;  %v3267_v2 = vld [vmem:[%s4847_s3 + $0x48] sm:$0xff] }
  0x4d   : > { %3682 = vmatprep.subr.mxu1 %v3226_v5  ;;  %3648 = vmatpush3.msra.mxu0 %v3210_v3  ;;  %v3266_v3 = vld [vmem:[%s4847_s3 + $0x40] sm:$0xff] }
  0x4e   : > { %3651 = vmatprep.mubr.f32.mxu0 %v4061_v15  ;;  %3649 = vmatprep.subr.mxu0 %v3209_v6  ;;  %v3252_v15 = vld [vmem:[%s4867_s28 + $0x258] sm:$0xff] }
  0x4f   : > { %3683 = vmatpush3.msra.mxu1 %v3226_v5  ;;  %3650 = vmatpush3.msra.mxu0 %v3209_v6  ;;  %v1477_v6 = vld [vmem:[%s4852_s8 + $0x38] sm:$0xff] }
  0x50   : > { %3684 = vmatprep.subr.mxu1 %v3225_v7  ;;  %3652 = vmatmul.mubr.f32.vlgmr.msra.gmra.mxu0 %v4064_v16  ;;  %v3251_v16 = vld [vmem:[%s4867_s28 + $0x250] sm:$0xff] }
  0x51   : > { %3689 = vmatprep.subr.mxu0 %v3256_v8  ;;  %3685 = vmatpush3.msra.mxu1 %v3225_v7  ;;  %v1476_v7 = vld [vmem:[%s4852_s8 + $0x30] sm:$0xff] }
  0x52   : > { %3686 = vmatprep.mubr.f32.mxu1 %v839_v9  ;;  %3690 = vmatpush3.msra.mxu0 %v3256_v8  ;;  %v1475_v8 = vld [vmem:[%s4852_s8 + $0x28] sm:$0xff]  ;;  %v1474_v9 = vld [vmem:[%s4852_s8 + $0x20] sm:$0xff] }
  0x53   : > { %3687 = vmatmul.mubr.f32.vlgmr.msra.gmra.mxu1 %v840_v10  ;;  %3691 = vmatprep.subr.mxu0 %v3255_v11 }
  0x54   : > { %3721 = vmatprep.mubr.f32.mxu0 %v935_v12  ;;  %3692 = vmatpush3.msra.mxu0 %v3255_v11 }
  0x55   : > { %3693 = vmatprep.subr.mxu0 %v3254_v13  ;;  %3724 = vmatprep.subr.mxu1 %v3261_v28 }
  0x56   : > { %3694 = vmatpush3.msra.mxu0 %v3254_v13  ;;  %3725 = vmatpush3.msra.mxu1 %v3261_v28  ;;  %v3281_v28 = vld [vmem:[%s4852_s8 + $0x60] sm:$0xff] }
  0x57   : > { %3695 = vmatprep.subr.mxu0 %v3253_v14  ;;  %3726 = vmatprep.subr.mxu1 %v3260_v29 }
  0x58   : > { %3696 = vmatpush3.msra.mxu0 %v3253_v14  ;;  %3727 = vmatpush3.msra.mxu1 %v3260_v29  ;;  %v1473_v29 = vld [vmem:[%s4852_s8 + $0x18] sm:$0xff] }
  0x59   : > { %3697 = vmatprep.subr.mxu0 %v3252_v15  ;;  %3728 = vmatprep.subr.mxu1 %v3259_v30 }
  0x5a   : > { %3698 = vmatpush3.msra.mxu0 %v3252_v15  ;;  %3729 = vmatpush3.msra.mxu1 %v3259_v30  ;;  %v3280_v30 = vld [vmem:[%s4852_s8 + $0x58] sm:$0xff] }
  0x5b   : > { %3699 = vmatprep.subr.mxu0 %v3251_v16  ;;  %3730 = vmatprep.subr.mxu1 %v3258_v31 }
  0x5c   : > { %3700 = vmatpush3.msra.mxu0 %v3251_v16  ;;  %3731 = vmatpush3.msra.mxu1 %v3258_v31  ;;  %v3272_v16 = vld [vmem:[%s4848_s4] ss:$0 sm:$0xff]  ;;  %v1472_v31 = vld [vmem:[%s4852_s8 + $0x10] sm:$0xff] }
  0x5d   : > { %3701 = vmatprep.subr.mxu0 %v3250_v17  ;;  %3735 = vmatprep.subr.mxu1 %v1050_v32 }
  0x5e   : > { %3702 = vmatpush3.msra.mxu0 %v3250_v17 }
  0x5f   : > { %3703 = vmatprep.subr.mxu0 %v3249_v18 }
  0x60   : > { %3704 = vmatpush3.msra.mxu0 %v3249_v18 }
  0x61   : > { %3705 = vmatprep.subr.mxu0 %v3248_v19 }
  0x62   : > { %3706 = vmatpush3.msra.mxu0 %v3248_v19 }
  0x63   : > { %3707 = vmatprep.subr.mxu0 %v3247_v20 }
  0x64   : > { %3708 = vmatpush3.msra.mxu0 %v3247_v20 }
  0x65   : > { %3709 = vmatprep.subr.mxu0 %v3246_v21 }
  0x66   : > { %3710 = vmatpush3.msra.mxu0 %v3246_v21 }
  0x67   : > { %3711 = vmatprep.subr.mxu0 %v3245_v22 }
  0x68   : > { %3712 = vmatpush3.msra.mxu0 %v3245_v22 }
  0x69   : > { %3713 = vmatprep.subr.mxu0 %v3244_v23 }
  0x6a   : > { %3714 = vmatpush3.msra.mxu0 %v3244_v23  ;;  %v1319_v23 = vld [vmem:[%s4851_s7] sm:$0xff] }
  0x6b   : > { %3715 = vmatprep.subr.mxu0 %v3243_v24 }
  0x6c   : > { %3716 = vmatpush3.msra.mxu0 %v3243_v24  ;;  %v3274_v24 = vld [vmem:[%s4851_s7 + $0x8] sm:$0xff] }
  0x6d   : > { %3717 = vmatprep.subr.mxu0 %v3242_v25 }
  0x6e   : > { %3718 = vmatpush3.msra.mxu0 %v3242_v25  ;;  %v3284_v25 = vld [vmem:[%s4852_s8 + $0x78] sm:$0xff] }
  0x6f   : > { %3719 = vmatprep.subr.mxu0 %v3241_v26 }
  0x70   : > { %3720 = vmatpush3.msra.mxu0 %v3241_v26  ;;  %v3283_v26 = vld [vmem:[%s4852_s8 + $0x70] sm:$0xff] }
  0x71   : > { %3722 = vmatmul.mubr.f32.vlgmr.msra.gmra.mxu0 %v936_v27  ;;  %3771 = vmatprep.subr.mxu0 %v3910_v4  ;;  %v3282_v27 = vld [vmem:[%s4852_s8 + $0x68] sm:$0xff] }
  0x72   : > { %3787 = vmatprep.mubr.msk.f32.mxu0 %vm3911_vm2, %v3910_v4  ;;  %3772 = vmatpush3.msra.mxu0 %v1477_v6  ;;  %v3297_v6 = vld [vmem:[%s4850_s6] ss:$0 sm:$0xff] }
  0x73   : > { %3773 = vmatprep.subr.mxu0 %v3910_v4 }
  0x74   : > { %3774 = vmatpush3.msra.mxu0 %v1476_v7 }
  0x75   : > { %3775 = vmatprep.subr.mxu0 %v3910_v4 }
  0x76   : > { %3776 = vmatpush3.msra.mxu0 %v1475_v8 }
  0x77   : > { %3777 = vmatprep.subr.mxu0 %v3910_v4 }
  0x78   : > { %3778 = vmatpush3.msra.mxu0 %v1474_v9 }
  0x79   : > { %3779 = vmatprep.subr.mxu0 %v3910_v4 }
  0x7a   : > { %3780 = vmatpush3.msra.mxu0 %v1473_v29  ;;  %v3308_v29 = vld [vmem:[%s4855_s11 + $0x48] sm:$0xff] }
  0x7b   : > { %3781 = vmatprep.subr.mxu0 %v3910_v4 }
  0x7c   : > { %3782 = vmatpush3.msra.mxu0 %v1472_v31  ;;  %v3307_v31 = vld [vmem:[%s4855_s11 + $0x40] sm:$0xff] }
  0x7d   : > { %3783 = vmatprep.subr.mxu0 %v3910_v4 }
  0xef   : > { %v3583_v33 = vpop.f32.mrf.mxu0 }
  0xf0   : > { %v3618_v34 = vpop.f32.mrf.mxu1 }
  0xf1   : > { %v659_v35 = vpop.f32.mrf.mxu0  ;;  %v740_v38 = vadd.f32 %v3618_v34, %v3583_v33  ;;  %v1471_v33 = vld [vmem:[%s4852_s8 + $0x8] sm:$0xff] }
  0xf2   : > { %v734_v37 = vpop.f32.mrf.mxu1  ;;  %v3278_v34 = vld [vmem:[%s4852_s8 + $0x48] sm:$0xff]  ;;  %3784 = vmatpush3.msra.mxu0 %v1471_v33  ;;  %v3314_v33 = vld [vmem:[%s4855_s11 + $0x78] sm:$0xff] }
  0xf3   : > { %v735_v41 = vadd.f32 %v734_v37, %v659_v35  ;;  %3785 = vmatprep.subr.mxu0 %v3910_v4  ;;  %v1470_v35 = vld [vmem:[%s4852_s8] sm:$0xff] }
  0xf4   : > { %3786 = vmatpush3.msra.mxu0 %v1470_v35 }
  0xf5   : > { %3809 = vmatprep.subr.mxu0 %v3910_v4 }
 0x110   : > { %v3653_v36 = vpop.f32.mrf.mxu0 }
 0x111   : > { %v838_v42 = vadd.f32 %v3653_v36, %v740_v38  ;;  %v3277_v36 = vld [vmem:[%s4852_s8 + $0x40] sm:$0xff] }
 0x112   : > { %v828_v39 = vpop.f32.mrf.mxu0 }
 0x113   : > { %v3688_v40 = vpop.f32.mrf.mxu1  ;;  %v837_v43 = vadd.f32 %v828_v39, %v735_v41 }
 0x114   : > { %v934_v45 = vadd.f32 %v3688_v40, %v838_v42  ;;  %v3289_v42 = vld [vmem:[%s4849_s5 + $0x38] sm:$0xff] }
 0x115   : > { %v924_v44 = vpop.f32.mrf.mxu1 }
 0x116   : > { %v933_v48 = vadd.f32 %v924_v44, %v837_v43  ;;  %v1638_v43 = vld [vmem:[%s4849_s5 + $0x18] sm:$0xff]  ;;  %v3288_v44 = vld [vmem:[%s4849_s5 + $0x30] sm:$0xff] }
 0x131   : > { %v3723_v46 = vpop.f32.mrf.mxu0 }
 0x132   : > { %v1030_v49 = vadd.f32 %v3723_v46, %v934_v45  ;;  %v1637_v45 = vld [vmem:[%s4849_s5 + $0x10] sm:$0xff]  ;;  %v3287_v46 = vld [vmem:[%s4849_s5 + $0x28] sm:$0xff] }
 0x133   : > { %v1020_v50 = vpop.f32.mrf.mxu0 }
 0x134   : > { %v1039_v51 = vadd.f32 %v3257_v47, %v1030_v49  ;;  %v1029_v52 = vadd.f32 %v1020_v50, %v933_v48  ;;  %v3286_v48 = vld [vmem:[%s4849_s5 + $0x20] sm:$0xff] }
 0x135   : > { %v1635_v49 = vld [vmem:[%s4849_s5] sm:$0xff] }
 0x136   : > { %v1041_v53 = vmax.f32 %v1039_v51, 0.0  ;;  %v1038_v54 = vadd.f32 %v3257_v47, %v1029_v52  ;;  %v1636_v47 = vld [vmem:[%s4849_s5 + $0x8] sm:$0xff] }
 0x138   : > { %1044 = vst.msk [vmem:[#allocation3 + $0x9] sm:$0xff] %vm1042_vm1, %v1041_v53  ;;  %v1040_v55 = vmax.f32 %v1038_v54, 0.0 }
 0x13a   : > { %1043 = vst.msk [vmem:[#allocation3 + $0x1] sm:$0xff] %vm1042_vm1, %v1040_v55 }
 0x13f   : > { %v1052_v57 = vld [vmem:[#allocation3 + $0x9] sm:$0xff] }
 0x140   : > { %v1221_v5 = vld [vmem:[#allocation3 + $0xa] sm:$0xff] }
 0x141   : > { %v1051_v56 = vld [vmem:[#allocation3 + $0x1] sm:$0xff] }
 0x142   : > { %3732 = vmatprep.mubr.msk.f32.mxu1 %vm1042_vm1, %v1051_v56  ;;  %v1045_v59 = vld [vmem:[#allocation3] sm:$0xff]  ;;  %v1046_v63 = vld [vmem:[#allocation3 + $0x8] sm:$0xff] }
 0x143   : > { %3733 = vmatmul.mubr.msk.f32.vlgmr.msra.gmra.mxu1 %vm1042_vm1, %v1052_v57  ;;  %v1220_v1 = vld [vmem:[#allocation3 + $0x2] sm:$0xff] }
 0x144   : > { %3736 = vmatpush3.msra.mxu1 %v1050_v32  ;;  %3743 = vmatprep.mubr.msk.f32.mxu1 %vm1042_vm1, %v1045_v59  ;;  %v3279_v32 = vld [vmem:[%s4852_s8 + $0x50] sm:$0xff]  ;;  %v3295_v56 = vld [vmem:[%s4849_s5 + $0x58] sm:$0xff] }
 0x145   : > { %3737 = vmatprep.subr.mxu1 %v1049_v58  ;;  %v3294_v59 = vld [vmem:[%s4849_s5 + $0x50] sm:$0xff] }
 0x146   : > { %3738 = vmatpush3.msra.mxu1 %v1049_v58 }
 0x147   : > { %3739 = vmatprep.subr.mxu1 %v1048_v60 }
 0x148   : > { %3740 = vmatpush3.msra.mxu1 %v1048_v60  ;;  %v3293_v60 = vld [vmem:[%s4849_s5 + $0x48] sm:$0xff] }
 0x149   : > { %3741 = vmatprep.subr.mxu1 %v1047_v61 }
 0x14a   : > { %3742 = vmatpush3.msra.mxu1 %v1047_v61  ;;  %v3292_v61 = vld [vmem:[%s4849_s5 + $0x40] sm:$0xff] }
 0x14b   : > { %3744 = vmatmul.mubr.msk.f32.vlgmr.msra.gmra.mxu1 %vm1042_vm1, %v1046_v63  ;;  %3746 = vmatprep.subr.mxu1 %v3269_v62 }
 0x14c   : > { %3747 = vmatpush3.msra.mxu1 %v3269_v62  ;;  %3754 = vmatprep.mubr.msk.f32.mxu1 %vm1042_vm1, %v1220_v1 }
 0x14d   : > { %3748 = vmatprep.subr.mxu1 %v3268_v0 }
 0x14e   : > { %3749 = vmatpush3.msra.mxu1 %v3268_v0 }
 0x14f   : > { %3750 = vmatprep.subr.mxu1 %v3267_v2 }
 0x150   : > { %3751 = vmatpush3.msra.mxu1 %v3267_v2 }
 0x151   : > { %3752 = vmatprep.subr.mxu1 %v3266_v3 }
 0x152   : > { %3753 = vmatpush3.msra.mxu1 %v3266_v3 }
 0x153   : > { %3755 = vmatmul.mubr.msk.f32.vlgmr.msra.gmra.mxu1 %vm1042_vm1, %v1221_v5  ;;  %3757 = vmatprep.subr.mxu1 %v3910_v4 }
 0x154   : > { %3761 = vmatprep.mubr.msk.f32.mxu1 %vm3911_vm2, %v3910_v4 }
 0x203   : > { %v3734_v10 = vpop.f32.mrf.mxu1 }
 0x205   : > { %v1130_v11 = vpop.f32.mrf.mxu1 }
 0x20b   : > { %v3745_v12 = vpop.f32.mrf.mxu1 }
 0x20c   : > { %v1217_v14 = vadd.f32 %v3745_v12, %v3734_v10  ;;  %v1879_v10 = vld [vmem:[%s4853_s9] sm:$0xf]  ;;  %v2033_v12 = vld [vmem:[%s4854_s10 + $0x18] sm:$0xff] }
 0x20d   : > { %v1211_v13 = vpop.f32.mrf.mxu1 }
 0x20e   : > { %v1212_v17 = vadd.f32 %v1211_v13, %v1130_v11  ;;  %v3299_v11 = vld [vmem:[%s4853_s9 + $0x4] sm:$0xf]  ;;  %v3305_v13 = vld [vmem:[%s4854_s10 + $0x38] sm:$0xff] }
 0x213   : > { %v3756_v15 = vpop.f32.mrf.mxu1 }
 0x214   : > { %v1309_v18 = vadd.f32 %v3756_v15, %v1217_v14  ;;  %v2032_v14 = vld [vmem:[%s4854_s10 + $0x10] sm:$0xff] }
 0x215   : > { %v1299_v19 = vpop.f32.mrf.mxu1  ;;  %v3304_v15 = vld [vmem:[%s4854_s10 + $0x30] sm:$0xff] }
 0x216   : > { %v1318_v20 = vadd.f32 %v3272_v16, %v1309_v18  ;;  %v1308_v21 = vadd.f32 %v1299_v19, %v1212_v17  ;;  %v3303_v17 = vld [vmem:[%s4854_s10 + $0x28] sm:$0xff]  ;;  %v2030_v18 = vld [vmem:[%s4854_s10] sm:$0xff] }
 0x217   : > { %v3302_v19 = vld [vmem:[%s4854_s10 + $0x20] sm:$0xff] }
 0x218   : > { %v1317_v22 = vadd.f32 %v3272_v16, %v1308_v21  ;;  %3758 = vmatpush3.msra.mxu1 %v1318_v20  ;;  %v2031_v16 = vld [vmem:[%s4854_s10 + $0x8] sm:$0xff] }
 0x219   : > { %3759 = vmatprep.subr.mxu1 %v3910_v4 }
 0x21a   : > { %3760 = vmatpush3.msra.mxu1 %v1317_v22 }
 0x21b   : > { %3762 = vmatmul.mubr.msk.f32.vlgmr.msra.gmra.mxu1 %vm1320_vm3, %v1319_v23  ;;  %3764 = vmatprep.subr.mxu1 %v3910_v4 }
 0x21c   : > { %3765 = vmatpush3.msra.mxu1 %v1318_v20  ;;  %3768 = vmatprep.mubr.msk.f32.mxu1 %vm3911_vm2, %v3910_v4 }
 0x21d   : > { %3766 = vmatprep.subr.mxu1 %v3910_v4 }
 0x21e   : > { %3767 = vmatpush3.msra.mxu1 %v1317_v22 }
 0x21f   : > { %3769 = vmatmul.mubr.msk.f32.vlgmr.msra.gmra.mxu1 %vm1320_vm3, %v3274_v24  ;;  %3790 = vmatprep.subr.mxu1 %v3910_v4 }
 0x220   : > { %3791 = vmatpush3.msra.mxu1 %v3284_v25  ;;  %3806 = vmatprep.mubr.msk.f32.mxu1 %vm3911_vm2, %v3910_v4  ;;  %v3312_v25 = vld [vmem:[%s4855_s11 + $0x68] sm:$0xff] }
 0x221   : > { %3792 = vmatprep.subr.mxu1 %v3910_v4 }
 0x222   : > { %3793 = vmatpush3.msra.mxu1 %v3283_v26  ;;  %v2201_v26 = vld [vmem:[%s4855_s11 + $0x28] sm:$0xff] }
 0x223   : > { %3794 = vmatprep.subr.mxu1 %v3910_v4 }
 0x224   : > { %3795 = vmatpush3.msra.mxu1 %v3282_v27  ;;  %v3311_v27 = vld [vmem:[%s4855_s11 + $0x60] sm:$0xff] }
 0x225   : > { %3796 = vmatprep.subr.mxu1 %v3910_v4 }
 0x226   : > { %3797 = vmatpush3.msra.mxu1 %v3281_v28  ;;  %v2200_v28 = vld [vmem:[%s4855_s11 + $0x20] sm:$0xff] }
 0x227   : > { %3798 = vmatprep.subr.mxu1 %v3910_v4 }
 0x228   : > { %3799 = vmatpush3.msra.mxu1 %v3280_v30  ;;  %v2197_v30 = vld [vmem:[%s4855_s11 + $0x8] sm:$0xff] }
 0x229   : > { %3800 = vmatprep.subr.mxu1 %v3910_v4 }
 0x22a   : > { %3801 = vmatpush3.msra.mxu1 %v3279_v32  ;;  %v2196_v32 = vld [vmem:[%s4855_s11] sm:$0xff] }
 0x22b   : > { %3802 = vmatprep.subr.mxu1 %v3910_v4 }
 0x22c   : > { %3803 = vmatpush3.msra.mxu1 %v3278_v34  ;;  %v3332_v34 = vld [vmem:[%s4855_s11 + $0xe8] sm:$0xff] }
 0x22d   : > { %3804 = vmatprep.subr.mxu1 %v3910_v4 }
 0x22e   : > { %3805 = vmatpush3.msra.mxu1 %v3277_v36 }
 0x22f   : > { %3820 = vmatprep.subr.mxu1 %v3910_v4 }
 0x2db   : > { %v1390_v37 = vpop.f32.mrf.mxu1 }
 0x2dd   : > { %v3763_v38 = vpop.f32.mrf.mxu1 }
 0x2df   : > { %v1465_v39 = vpop.f32.mrf.mxu1 }
 0x2e0   : > { %v1469_v40 = vmax.f32 %v1390_v37, %v1465_v39 }
 0x2e1   : > { %v3770_v41 = vpop.f32.mrf.mxu1 }
 0x2e2   : > { %3788 = vmatmul.mubr.msk.f32.vlgmr.msra.gmra.mxu0 %vm1478_vm4, %v1469_v40  ;;  %3807 = vmatmul.mubr.msk.f32.vlgmr.msra.gmra.mxu1 %vm1478_vm4, %v1469_v40  ;;  %v3313_v41 = vld [vmem:[%s4855_s11 + $0x70] sm:$0xff] }
 0x2e3   : > { %3817 = vmatprep.mubr.msk.f32.mxu0 %vm3911_vm2, %v3910_v4  ;;  %3828 = vmatprep.mubr.msk.f32.mxu1 %vm3911_vm2, %v3910_v4 }
 0x2e4   : > { %3810 = vmatpush3.msra.mxu0 %v3289_v42  ;;  %3821 = vmatpush3.msra.mxu1 %v1638_v43  ;;  %v3331_v42 = vld [vmem:[%s4855_s11 + $0xe0] sm:$0xff]  ;;  %v3310_v43 = vld [vmem:[%s4855_s11 + $0x58] sm:$0xff] }
 0x2e5   : > { %3811 = vmatprep.subr.mxu0 %v3910_v4  ;;  %3822 = vmatprep.subr.mxu1 %v3910_v4 }
 0x2e6   : > { %3812 = vmatpush3.msra.mxu0 %v3288_v44  ;;  %3823 = vmatpush3.msra.mxu1 %v1637_v45 }
 0x2e7   : > { %3813 = vmatprep.subr.mxu0 %v3910_v4  ;;  %3824 = vmatprep.subr.mxu1 %v3910_v4 }
 0x2e8   : > { %3814 = vmatpush3.msra.mxu0 %v3287_v46  ;;  %3825 = vmatpush3.msra.mxu1 %v1636_v47  ;;  %v3328_v46 = vld [vmem:[%s4855_s11 + $0xc8] sm:$0xff]  ;;  %v3309_v47 = vld [vmem:[%s4855_s11 + $0x50] sm:$0xff] }
 0x2e9   : > { %3815 = vmatprep.subr.mxu0 %v3910_v4  ;;  %3826 = vmatprep.subr.mxu1 %v3910_v4 }
 0x2ea   : > { %3816 = vmatpush3.msra.mxu0 %v3286_v48  ;;  %3827 = vmatpush3.msra.mxu1 %v1635_v49  ;;  %v3327_v48 = vld [vmem:[%s4855_s11 + $0xc0] sm:$0xff]  ;;  %v2203_v49 = vld [vmem:[%s4855_s11 + $0x38] sm:$0xff] }
 0x2eb   : > { %3831 = vmatprep.subr.mxu0 %v3910_v4  ;;  %3842 = vmatprep.subr.mxu1 %v3910_v4 }
 0x3a2   : > { %v1548_v50 = vpop.f32.mrf.mxu0  ;;  %v1627_v51 = vpop.f32.mrf.mxu1 }
 0x3a3   : > { %v1631_v52 = vmax.f32 %v1548_v50, %v1627_v51  ;;  %v3324_v50 = vld [vmem:[%s4855_s11 + $0xa8] sm:$0xff]  ;;  %v2202_v51 = vld [vmem:[%s4855_s11 + $0x30] sm:$0xff] }
 0x3a4   : > { %v3789_v53 = vpop.f32.mrf.mxu0  ;;  %v3808_v54 = vpop.f32.mrf.mxu1 }
 0x3a5   : > { %v1632_v55 = vmax.f32 %v1631_v52, 0.0  ;;  %v3323_v52 = vld [vmem:[%s4855_s11 + $0xa0] sm:$0xff]  ;;  %v2199_v54 = vld [vmem:[%s4855_s11 + $0x18] sm:$0xff] }
 0x3a7   : > { %1633 = vst.msk [vmem:[#allocation4 + $0x1] sm:$0xff] %vm1042_vm1, %v1632_v55  ;;  %v3320_v55 = vld [vmem:[%s4855_s11 + $0x88] sm:$0xff] }
 0x3ae   : > { %v1639_v57 = vld [vmem:[#allocation4 + $0x1] sm:$0xff] }
 0x3af   : > { %v1634_v58 = vld [vmem:[#allocation4] sm:$0xff]  ;;  %3818 = vmatmul.mubr.msk.f32.vlgmr.msra.gmra.mxu0 %vm1042_vm1, %v1639_v57  ;;  %v3319_v57 = vld [vmem:[%s4855_s11 + $0x80] sm:$0xff] }
 0x3b0   : > { %3829 = vmatmul.mubr.msk.f32.vlgmr.msra.gmra.mxu1 %vm1042_vm1, %v1634_v58  ;;  %3832 = vmatpush3.msra.mxu0 %v3295_v56  ;;  %v1791_v62 = vld [vmem:[#allocation4 + $0x2] sm:$0xff] }
 0x3b1   : > { %3839 = vmatprep.mubr.msk.f32.mxu0 %vm3911_vm2, %v3910_v4  ;;  %3833 = vmatprep.subr.mxu0 %v3910_v4  ;;  %v2198_v56 = vld [vmem:[%s4855_s11 + $0x10] sm:$0xff]  ;;  %v3334_v58 = vld [vmem:[%s4855_s11 + $0xf8] sm:$0xff] }
 0x3b2   : > { %3844 = vmatprep.mubr.msk.f32.mxu1 %vm3911_vm2, %v3910_v4  ;;  %3834 = vmatpush3.msra.mxu0 %v3294_v59  ;;  %v3333_v59 = vld [vmem:[%s4855_s11 + $0xf0] sm:$0xff] }
 0x3b3   : > { %3835 = vmatprep.subr.mxu0 %v3910_v4 }
 0x3b4   : > { %3836 = vmatpush3.msra.mxu0 %v3293_v60  ;;  %v3330_v60 = vld [vmem:[%s4855_s11 + $0xd8] sm:$0xff] }
 0x3b5   : > { %3837 = vmatprep.subr.mxu0 %v3910_v4 }
 0x3b6   : > { %3838 = vmatpush3.msra.mxu0 %v3292_v61 }
 0x3b7   : > { %3840 = vmatmul.mubr.msk.f32.vlgmr.msra.gmra.mxu0 %vm1042_vm1, %v1791_v62  ;;  %3852 = vmatprep.subr.mxu0 %v3910_v4  ;;  %v3329_v62 = vld [vmem:[%s4855_s11 + $0xd0] sm:$0xff] }
 0x3b8   : > { %3860 = vmatprep.mubr.msk.f32.mxu0 %vm3911_vm2, %v3910_v4  ;;  %3853 = vmatpush3.msra.mxu0 %v2033_v12  ;;  %v2860_v12 = vld [vmem:[%s4857_s13 + $0x60] sm:$0xff] }
 0x3b9   : > { %3854 = vmatprep.subr.mxu0 %v3910_v4 }
 0x3ba   : > { %3855 = vmatpush3.msra.mxu0 %v2032_v14  ;;  %v2875_v14 = vld [vmem:[%s4857_s13 + $0xd8] sm:$0xff] }
 0x3bb   : > { %3856 = vmatprep.subr.mxu0 %v3910_v4 }
 0x3bc   : > { %3857 = vmatpush3.msra.mxu0 %v2031_v16  ;;  %v2893_v16 = vld [vmem:[%s4857_s13 + $0x168] sm:$0xff] }
 0x3bd   : > { %3858 = vmatprep.subr.mxu0 %v3910_v4 }
 0x3be   : > { %3859 = vmatpush3.msra.mxu0 %v2030_v18  ;;  %v2858_v18 = vld [vmem:[%s4857_s13 + $0x50] sm:$0xff] }
 0x3bf   : > { %2390 = vmatprep.subr.mxu0 %v2201_v26  ;;  %v2871_v26 = vld [vmem:[%s4857_s13 + $0xb8] sm:$0xff] }
 0x46f   : > { %v1714_v63 = vpop.f32.mrf.mxu0 }
 0x470   : > { %v1787_v0 = vpop.f32.mrf.mxu1 }
 0x471   : > { %v3819_v1 = vpop.f32.mrf.mxu0  ;;  %v1788_v3 = vadd.f32 %v1787_v0, %v1714_v63  ;;  %v2879_v63 = vld [vmem:[%s4857_s13 + $0xf8] sm:$0xff] }
 0x472   : > { %v3830_v2 = vpop.f32.mrf.mxu1  ;;  %v3326_v0 = vld [vmem:[%s4855_s11 + $0xb8] sm:$0xff]  ;;  %v3325_v1 = vld [vmem:[%s4855_s11 + $0xb0] sm:$0xff] }
 0x473   : > { %v3322_v2 = vld [vmem:[%s4855_s11 + $0x98] sm:$0xff] }
 0x477   : > { %v1866_v5 = vpop.f32.mrf.mxu0 }
 0x478   : > { %v1870_v7 = vadd.f32 %v1866_v5, %v1788_v3  ;;  %v2863_v3 = vld [vmem:[%s4857_s13 + $0x78] sm:$0xff]  ;;  %v3321_v5 = vld [vmem:[%s4855_s11 + $0x90] sm:$0xff] }
 0x479   : > { %v3841_v8 = vpop.f32.mrf.mxu0 }
 0x47a   : > { %v1878_v9 = vadd.f32 %v3297_v6, %v1870_v7  ;;  %v2878_v6 = vld [vmem:[%s4857_s13 + $0xf0] sm:$0xff]  ;;  %v2877_v8 = vld [vmem:[%s4857_s13 + $0xe8] sm:$0xff] }
 0x47b   : > { %v2862_v7 = vld [vmem:[%s4857_s13 + $0x70] sm:$0xff] }
 0x47c   : > { %3843 = vmatpush3.msra.mxu1 %v1878_v9 }
 0x47d   : > { %3845 = vmatmul.mubr.msk.f32.vlgmr.msra.gmra.mxu1 %vm1880_vm5, %v1879_v10  ;;  %3847 = vmatprep.subr.mxu1 %v3910_v4  ;;  %v2895_v10 = vld [vmem:[%s4857_s13 + $0x178] sm:$0xff] }
 0x47e   : > { %3848 = vmatpush3.msra.mxu1 %v1878_v9  ;;  %3849 = vmatprep.mubr.msk.f32.mxu1 %vm3911_vm2, %v3910_v4  ;;  %v2861_v9 = vld [vmem:[%s4857_s13 + $0x68] sm:$0xff] }
 0x47f   : > { %3863 = vmatprep.subr.mxu1 %v3910_v4 }
 0x481   : > { %3850 = vmatmul.mubr.msk.f32.vlgmr.msra.gmra.mxu1 %vm1880_vm5, %v3299_v11  ;;  %v2876_v11 = vld [vmem:[%s4857_s13 + $0xe0] sm:$0xff] }
 0x482   : > { %3871 = vmatprep.mubr.msk.f32.mxu1 %vm3911_vm2, %v3910_v4  ;;  %3864 = vmatpush3.msra.mxu1 %v3305_v13  ;;  %v2894_v13 = vld [vmem:[%s4857_s13 + $0x170] sm:$0xff] }
 0x483   : > { %3865 = vmatprep.subr.mxu1 %v3910_v4 }
 0x484   : > { %3866 = vmatpush3.msra.mxu1 %v3304_v15  ;;  %v2859_v15 = vld [vmem:[%s4857_s13 + $0x58] sm:$0xff] }
 0x485   : > { %3867 = vmatprep.subr.mxu1 %v3910_v4 }
 0x486   : > { %3868 = vmatpush3.msra.mxu1 %v3303_v17  ;;  %v2874_v17 = vld [vmem:[%s4857_s13 + $0xd0] sm:$0xff] }
 0x487   : > { %3869 = vmatprep.subr.mxu1 %v3910_v4 }
 0x488   : > { %3870 = vmatpush3.msra.mxu1 %v3302_v19  ;;  %v2892_v19 = vld [vmem:[%s4857_s13 + $0x160] sm:$0xff] }
 0x489   : > { %2245 = vmatprep.subr.mxu1 %v3312_v25  ;;  %v2890_v25 = vld [vmem:[%s4857_s13 + $0x150] sm:$0xff] }
 0x53d   : > { %v1950_v20 = vpop.f32.mrf.mxu1 }
 0x53f   : > { %v3846_v21 = vpop.f32.mrf.mxu1 }
 0x540   : > { %v2857_v21 = vld [vmem:[%s4857_s13 + $0x48] sm:$0xff] }
 0x541   : > { %v2025_v22 = vpop.f32.mrf.mxu1 }
 0x542   : > { %v2029_v23 = vmax.f32 %v1950_v20, %v2025_v22  ;;  %v2873_v20 = vld [vmem:[%s4857_s13 + $0xc8] sm:$0xff]  ;;  %v2891_v22 = vld [vmem:[%s4857_s13 + $0x158] sm:$0xff] }
 0x543   : > { %v3851_v24 = vpop.f32.mrf.mxu1 }
 0x544   : > { %3861 = vmatmul.mubr.msk.f32.vlgmr.msra.gmra.mxu0 %vm1042_vm1, %v2029_v23  ;;  %3872 = vmatmul.mubr.msk.f32.vlgmr.msra.gmra.mxu1 %vm1042_vm1, %v2029_v23  ;;  %v2872_v23 = vld [vmem:[%s4857_s13 + $0xc0] sm:$0xff] }
 0x545   : > { %2281 = vmatprep.mubr.f32.mxu1 %v3910_v4  ;;  %2426 = vmatprep.mubr.f32.mxu0 %v3910_v4  ;;  %v2856_v24 = vld [vmem:[%s4857_s13 + $0x40] sm:$0xff] }
 0x546   : > { %2246 = vmatpush1.msra.mxu1 %v3311_v27  ;;  %2391 = vmatpush1.msra.mxu0 %v2200_v28  ;;  %v2855_v27 = vld [vmem:[%s4857_s13 + $0x38] sm:$0xff]  ;;  %v2889_v28 = vld [vmem:[%s4857_s13 + $0x148] sm:$0xff] }
 0x547   : > { %2247 = vmatprep.subr.mxu1 %v3308_v29  ;;  %2392 = vmatprep.subr.mxu0 %v2197_v30  ;;  %v2870_v29 = vld [vmem:[%s4857_s13 + $0xb0] sm:$0xff] }
 0x548   : > { %2248 = vmatpush1.msra.mxu1 %v3307_v31  ;;  %2393 = vmatpush1.msra.mxu0 %v2196_v32  ;;  %v2854_v30 = vld [vmem:[%s4857_s13 + $0x30] sm:$0xff]  ;;  %v2888_v31 = vld [vmem:[%s4857_s13 + $0x140] sm:$0xff]  ;;  %v2869_v32 = vld [vmem:[%s4857_s13 + $0xa8] sm:$0xff] }
 0x549   : > { %2316 = vmatprep.subr.mxu1 %v3314_v33  ;;  %2555 = vmatprep.subr.mxu0 %v3332_v34  ;;  %v2853_v33 = vld [vmem:[%s4857_s13 + $0x28] sm:$0xff]  ;;  %v2887_v34 = vld [vmem:[%s4857_s13 + $0x138] sm:$0xff] }
 0x604   : > { %v2103_v35 = vpop.f32.mrf.mxu0  ;;  %v2178_v36 = vpop.f32.mrf.mxu1 }
 0x605   : > { %v2182_v37 = vmax.f32 %v2103_v35, %v2178_v36  ;;  %v2868_v35 = vld [vmem:[%s4857_s13 + $0xa0] sm:$0xff] }
 0x606   : > { %v3862_v38 = vpop.f32.mrf.mxu0  ;;  %v3873_v39 = vpop.f32.mrf.mxu1  ;;  %v2852_v36 = vld [vmem:[%s4857_s13 + $0x20] sm:$0xff] }
 0x607   : > { %v2183_v40 = vmax.f32 %v2182_v37, 0.0  ;;  %v2886_v37 = vld [vmem:[%s4857_s13 + $0x130] sm:$0xff]  ;;  %v2867_v38 = vld [vmem:[%s4857_s13 + $0x98] sm:$0xff] }
 0x608   : > { %v2851_v39 = vld [vmem:[%s4857_s13 + $0x18] sm:$0xff] }
 0x609   : > { %2185 = vst.msk [vmem:[#allocation5] sm:$0x1] %vm2184_vm6, %v2183_v40 }
 0x60a   : > { %2188 = vst.msk [vmem:[#allocation5] sm:$0x2] %vm2187_vm7, %v2183_v40 }
 0x60b   : > { %2191 = vst.msk [vmem:[#allocation5] sm:$0x4] %vm2190_vm8, %v2183_v40 }
 0x60c   : > { %2194 = vst.msk [vmem:[#allocation5] sm:$0x8] %vm2193_vm9, %v2183_v40  ;;  %v2885_v40 = vld [vmem:[%s4857_s13 + $0x128] sm:$0xff] }
 0x610   : > { %v2195_v45 = vld [vmem:[#allocation5] sm:$0x1] }
 0x611   : > { %v2204_v44 = vld [vmem:[#allocation5 + $0x1] sm:$0x1]  ;;  %3317 = vmatmul.mubr.msk.f32.vlgmr.msra.gmra.mxu0 %vm1320_vm3, %v2195_v45 }
 0x612   : > { %3315 = vmatmul.mubr.msk.f32.vlgmr.msra.gmra.mxu1 %vm1320_vm3, %v2204_v44  ;;  %2556 = vmatpush1.msra.mxu0 %v3331_v42  ;;  %v2504_v61 = vld [vmem:[#allocation5 + $0x2] sm:$0x1]  ;;  %v2850_v42 = vld [vmem:[%s4857_s13 + $0x10] sm:$0xff] }
 0x613   : > { %2317 = vmatpush1.msra.mxu1 %v3313_v41  ;;  %2557 = vmatprep.subr.mxu0 %v3328_v46  ;;  %v2514_v53 = vld [vmem:[#allocation5 + $0x3] sm:$0x1]  ;;  %v2866_v41 = vld [vmem:[%s4857_s13 + $0x90] sm:$0xff]  ;;  %v2883_v46 = vld [vmem:[%s4857_s13 + $0x118] sm:$0xff] }
 0x614   : > { %2318 = vmatprep.subr.mxu1 %v3310_v43  ;;  %2352 = vmatprep.mubr.f32.mxu1 %v3910_v4  ;;  %v2884_v43 = vld [vmem:[%s4857_s13 + $0x120] sm:$0xff] }
 0x615   : > { %2319 = vmatpush1.msra.mxu1 %v3309_v47  ;;  %2558 = vmatpush1.msra.mxu0 %v3327_v48  ;;  %v2864_v47 = vld [vmem:[%s4857_s13 + $0x80] sm:$0xff] }
 0x616   : > { %2591 = vmatprep.mubr.f32.mxu0 %v3910_v4  ;;  %3316 = vmatmul.mubr.msk.f32.vlgmr.msra.gmra.mxu1 %vm1320_vm3, %v2204_v44  ;;  %v2865_v44 = vld [vmem:[%s4857_s13 + $0x88] sm:$0xff]  ;;  %v2848_v48 = vld [vmem:[%s4857_s13] sm:$0xff] }
 0x617   : > { %2461 = vmatprep.subr.mxu1 %v2203_v49  ;;  %3335 = vmatmul.mubr.msk.f32.vlgmr.msra.gmra.mxu0 %vm1320_vm3, %v2514_v53  ;;  %v2882_v49 = vld [vmem:[%s4857_s13 + $0x110] sm:$0xff] }
 0x618   : > { %2700 = vmatprep.subr.mxu0 %v3324_v50  ;;  %2462 = vmatpush1.msra.mxu1 %v2202_v51  ;;  %v2881_v50 = vld [vmem:[%s4857_s13 + $0x108] sm:$0xff]  ;;  %v2880_v51 = vld [vmem:[%s4857_s13 + $0x100] sm:$0xff] }
 0x619   : > { %2701 = vmatpush1.msra.mxu0 %v3323_v52  ;;  %2463 = vmatprep.subr.mxu1 %v2199_v54  ;;  %v2897_v52 = vld [vmem:[%s4857_s13 + $0x188] sm:$0xff] }
 0x61a   : > { %2702 = vmatprep.subr.mxu0 %v3320_v55  ;;  %2464 = vmatpush1.msra.mxu1 %v2198_v56 }
 0x61b   : > { %2497 = vmatprep.mubr.f32.mxu1 %v3910_v4  ;;  %2703 = vmatpush1.msra.mxu0 %v3319_v57 }
 0x61c   : > { %2736 = vmatprep.mubr.f32.mxu0 %v3910_v4  ;;  %3318 = vmatmul.mubr.msk.f32.vlgmr.msra.gmra.mxu1 %vm1320_vm3, %v2195_v45  ;;  %v2849_v45 = vld [vmem:[%s4857_s13 + $0x8] sm:$0xff] }
 0x61d   : > { %2626 = vmatprep.subr.mxu1 %v3334_v58  ;;  %3337 = vmatmul.mubr.msk.f32.vlgmr.msra.gmra.mxu0 %vm1320_vm3, %v2504_v61  ;;  %v2820_v58 = vlaneseq }
 0x61e   : > { %2627 = vmatpush1.msra.mxu1 %v3333_v59  ;;  %2662 = vmatprep.mubr.f32.mxu1 %v3910_v4 }
 0x61f   : > { %2628 = vmatprep.subr.mxu1 %v3330_v60  ;;  %3506 = vmatprep.subr.mxu0 %v2879_v63 }
 0x620   : > { %2629 = vmatpush1.msra.mxu1 %v3329_v62  ;;  %3507 = vmatpush3.msra.mxu0 %v2863_v3 }
 0x621   : > { %3336 = vmatmul.mubr.msk.f32.vlgmr.msra.gmra.mxu1 %vm1320_vm3, %v2514_v53  ;;  %2771 = vmatprep.subr.mxu1 %v3326_v0  ;;  %v2896_v53 = vld [vmem:[%s4857_s13 + $0x180] sm:$0xff] }
 0x622   : > { %2772 = vmatpush1.msra.mxu1 %v3325_v1  ;;  %2807 = vmatprep.mubr.f32.mxu1 %v3910_v4 }
 0x623   : > { %2773 = vmatprep.subr.mxu1 %v3322_v2  ;;  %3508 = vmatprep.subr.mxu0 %v2878_v6  ;;  %v2818_v2 = vld [vmem:[%s4856_s12] sm:$0xf] }
 0x624   : > { %2774 = vmatpush1.msra.mxu1 %v3321_v5  ;;  %3509 = vmatpush3.msra.mxu0 %v2862_v7 }
 0x625   : > { %3338 = vmatmul.mubr.msk.f32.vlgmr.msra.gmra.mxu1 %vm1320_vm3, %v2504_v61  ;;  %3510 = vmatprep.subr.mxu0 %v2877_v8  ;;  %v2821_v61 = vshrl.u32 %v2820_v58, 7 }
 0x626   : > { %2972 = vmatprep.subr.mxu1 %v3910_v4  ;;  %3511 = vmatpush3.msra.mxu0 %v2861_v9 }
 0x627   : > { %2973 = vmatpush1.msra.mxu1 %v2895_v10  ;;  %3512 = vmatprep.subr.mxu0 %v2876_v11  ;;  %v2822_v0 = vsub.s32 0, %v2821_v61  ;;  %v2826_v3 = vsub.s32 1, %v2821_v61 }
 0x628   : > { %2974 = vmatprep.subr.mxu1 %v3910_v4  ;;  %3513 = vmatpush3.msra.mxu0 %v2860_v12 }
 0x629   : > { %2975 = vmatpush1.msra.mxu1 %v2894_v13  ;;  %3514 = vmatprep.subr.mxu0 %v2875_v14  ;;  %v2823_v9 = vrot.slane %v2818_v2, %v2822_v0 }
 0x62a   : > { %2976 = vmatprep.subr.mxu1 %v3910_v4  ;;  %3515 = vmatpush3.msra.mxu0 %v2859_v15  ;;  %v2827_v15 = vrot.slane %v2818_v2, %v2826_v3 }
 0x62b   : > { %2977 = vmatpush1.msra.mxu1 %v2893_v16  ;;  %3516 = vmatprep.subr.mxu0 %v2874_v17 }
 0x62c   : > { %2978 = vmatprep.subr.mxu1 %v3910_v4  ;;  %3517 = vmatpush3.msra.mxu0 %v2858_v18  ;;  %v2830_v18 = vsub.s32 2, %v2821_v61 }
 0x62d   : > { %2979 = vmatpush1.msra.mxu1 %v2892_v19  ;;  %3518 = vmatprep.subr.mxu0 %v2873_v20  ;;  %v2834_v19 = vsub.s32 3, %v2821_v61 }
 0x62e   : > { %2980 = vmatprep.subr.mxu1 %v3910_v4  ;;  %3519 = vmatpush3.msra.mxu0 %v2857_v21 }
 0x62f   : > { %2981 = vmatpush1.msra.mxu1 %v2891_v22  ;;  %3520 = vmatprep.subr.mxu0 %v2872_v23 }
 0x630   : > { %2982 = vmatprep.subr.mxu1 %v3910_v4  ;;  %3521 = vmatpush3.msra.mxu0 %v2856_v24 }
 0x631   : > { %2983 = vmatpush1.msra.mxu1 %v2890_v25  ;;  %3522 = vmatprep.subr.mxu0 %v2871_v26  ;;  %v2831_v25 = vrot.slane %v2818_v2, %v2830_v18 }
 0x632   : > { %2984 = vmatprep.subr.mxu1 %v3910_v4  ;;  %3523 = vmatpush3.msra.mxu0 %v2855_v27  ;;  %v2835_v27 = vrot.slane %v2818_v2, %v2834_v19 }
 0x633   : > { %2985 = vmatpush1.msra.mxu1 %v2889_v28  ;;  %3524 = vmatprep.subr.mxu0 %v2870_v29 }
 0x634   : > { %2986 = vmatprep.subr.mxu1 %v3910_v4  ;;  %3525 = vmatpush3.msra.mxu0 %v2854_v30 }
 0x635   : > { %2987 = vmatpush1.msra.mxu1 %v2888_v31  ;;  %3526 = vmatprep.subr.mxu0 %v2869_v32 }
 0x636   : > { %2988 = vmatprep.subr.mxu1 %v3910_v4  ;;  %3527 = vmatpush3.msra.mxu0 %v2853_v33 }
 0x637   : > { %2989 = vmatpush1.msra.mxu1 %v2887_v34  ;;  %3528 = vmatprep.subr.mxu0 %v2868_v35 }
 0x638   : > { %2990 = vmatprep.subr.mxu1 %v3910_v4  ;;  %3529 = vmatpush3.msra.mxu0 %v2852_v36 }
 0x639   : > { %2991 = vmatpush1.msra.mxu1 %v2886_v37  ;;  %3530 = vmatprep.subr.mxu0 %v2867_v38  ;;  %v3049_v38 = vld [vmem:[%s4859_s15 + $0x30] sm:$0x3] }
 0x63a   : > { %2992 = vmatprep.subr.mxu1 %v3910_v4  ;;  %3531 = vmatpush3.msra.mxu0 %v2851_v39  ;;  %v3048_v39 = vld [vmem:[%s4859_s15 + $0x28] sm:$0xff] }
 0x63b   : > { %2993 = vmatpush1.msra.mxu1 %v2885_v40  ;;  %3532 = vmatprep.subr.mxu0 %v2866_v41  ;;  %v3047_v40 = vld [vmem:[%s4859_s15 + $0x20] sm:$0xff]  ;;  %v3046_v41 = vld [vmem:[%s4859_s15 + $0x18] sm:$0xff] }
 0x63c   : > { %2994 = vmatprep.subr.mxu1 %v3910_v4  ;;  %3533 = vmatpush3.msra.mxu0 %v2850_v42  ;;  %v3045_v42 = vld [vmem:[%s4859_s15 + $0x10] sm:$0xff] }
 0x63d   : > { %2995 = vmatpush1.msra.mxu1 %v2884_v43  ;;  %3534 = vmatprep.subr.mxu0 %v2865_v44  ;;  %v3044_v43 = vld [vmem:[%s4859_s15 + $0x8] sm:$0xff]  ;;  %v3043_v44 = vld [vmem:[%s4859_s15] sm:$0xff] }
 0x63e   : > { %2996 = vmatprep.subr.mxu1 %v3910_v4  ;;  %3535 = vmatpush3.msra.mxu0 %v2849_v45 }
 0x63f   : > { %2997 = vmatpush1.msra.mxu1 %v2883_v46  ;;  %3536 = vmatprep.subr.mxu0 %v2864_v47 }
 0x640   : > { %2998 = vmatprep.subr.mxu1 %v3910_v4  ;;  %3537 = vmatpush3.msra.mxu0 %v2848_v48  ;;  %v2898_v48 = vld [vmem:[%s4858_s14] sm:$0x1] }
 0x641   : > { %2999 = vmatpush1.msra.mxu1 %v2882_v49  ;;  %3874 = vmatprep.subr.mxu0 %v3910_v4 }
 0x642   : > { %3000 = vmatprep.subr.mxu1 %v3910_v4 }
 0x643   : > { %3001 = vmatpush1.msra.mxu1 %v2881_v50 }
 0x644   : > { %3002 = vmatprep.subr.mxu1 %v3910_v4 }
 0x645   : > { %3003 = vmatpush1.msra.mxu1 %v2880_v51 }
 0x646   : > { %3032 = vmatprep.subr.mxu1 %v3910_v4 }
 0x647   : > { %3033 = vmatpush2.msra.mxu1 %v2897_v52 }
 0x648   : > { %3034 = vmatprep.subr.mxu1 %v3910_v4 }
 0x649   : > { %3035 = vmatpush2.msra.mxu1 %v2896_v53 }
 0x6d1   : > { %v2428_v55 = vpop.f32.mrf.mxu0 }
 0x6d2   : > { %v2283_v54 = vpop.f32.mrf.mxu1 }
 0x6d3   : > { %v2430_v57 = vpop.f32.mrf.mxu0  ;;  %v2429_v6 = vadd.f32 %v2428_v55, %v2283_v54  ;;  %v3050_v54 = vld [vmem:[%s4860_s16] sm:$0x1] }
 0x6d4   : > { %v2285_v56 = vpop.f32.mrf.mxu1 }
 0x6d5   : > { %v2431_v11 = vadd.f32 %v2430_v57, %v2285_v56 }
 0x6d6   : > { %v2354_v59 = vpop.f32.mrf.mxu1 }
 0x6d7   : > { %v2593_v60 = vpop.f32.mrf.mxu0 }
 0x6d8   : > { %v2356_v62 = vpop.f32.mrf.mxu1 }
 0x6d9   : > { %v2595_v63 = vpop.f32.mrf.mxu0 }
 0x6dc   : > { %v2499_v1 = vpop.f32.mrf.mxu1 }
 0x6dd   : > { %v2738_v5 = vpop.f32.mrf.mxu0  ;;  %v2500_v23 = vadd.f32 %v2499_v1, %v2354_v59 }
 0x6de   : > { %v2739_v7 = vadd.f32 %v2738_v5, %v2593_v60  ;;  %v2501_v8 = vpop.f32.mrf.mxu1 }
 0x6df   : > { %v2740_v10 = vpop.f32.mrf.mxu0  ;;  %v2502_v30 = vadd.f32 %v2501_v8, %v2356_v62 }
 0x6e0   : > { %v2814_v12 = vadd.f32 %v2739_v7, %v2429_v6  ;;  %v2741_v13 = vadd.f32 %v2740_v10, %v2595_v63 }
 0x6e1   : > { %v2664_v14 = vpop.f32.mrf.mxu1 }
 0x6e2   : > { %v2815_v16 = vadd.f32 %v2741_v13, %v2431_v11  ;;  %v2840_v20 = vadd.f32 %v2823_v9, %v2814_v12 }
 0x6e3   : > { %v2666_v17 = vpop.f32.mrf.mxu1 }
 0x6e4   : > { %v2841_v22 = vadd.f32 %v2827_v15, %v2815_v16  ;;  %v2844_v29 = vmax.f32 %v2840_v20, 0.0 }
 0x6e5   : > { %v2809_v21 = vpop.f32.mrf.mxu1 }
 0x6e6   : > { %v2810_v24 = vadd.f32 %v2809_v21, %v2664_v14  ;;  %v2845_v28 = vmax.f32 %v2841_v22, 0.0 }
 0x6e7   : > { %v2811_v26 = vpop.f32.mrf.mxu1 }
 0x6e8   : > { %v2816_v31 = vadd.f32 %v2810_v24, %v2500_v23  ;;  %v2812_v32 = vadd.f32 %v2811_v26, %v2666_v17  ;;  %2966 = vmatprep.mubr.f32.mxu0 %v2845_v28 }
 0x6e9   : > { %2967 = vmatmul.mubr.f32.vlgmr.msra.gmra.mxu0 %v2844_v29 }
 0x6ea   : > { %v2817_v33 = vadd.f32 %v2812_v32, %v2502_v30  ;;  %v2842_v34 = vadd.f32 %v2831_v25, %v2816_v31  ;;  %3888 = vmatprep.mubr.msk.f32.mxu0 %vm3911_vm2, %v3910_v4  ;;  %3875 = vmatpush3.msk.msra.mxu0 %vm3055_vm10, %v3049_v38 }
 0x6eb   : > { %3876 = vmatprep.subr.mxu0 %v3910_v4 }
 0x6ec   : > { %v2843_v35 = vadd.f32 %v2835_v27, %v2817_v33  ;;  %v2846_v37 = vmax.f32 %v2842_v34, 0.0  ;;  %3877 = vmatpush3.msra.mxu0 %v3048_v39 }
 0x6ed   : > { %3878 = vmatprep.subr.mxu0 %v3910_v4 }
 0x6ee   : > { %v2847_v36 = vmax.f32 %v2843_v35, 0.0  ;;  %3879 = vmatpush3.msra.mxu0 %v3047_v40 }
 0x6ef   : > { %3880 = vmatprep.subr.mxu0 %v3910_v4 }
 0x6f0   : > { %3339 = vmatprep.mubr.msk.f32.mxu1 %vm1320_vm3, %v2847_v36  ;;  %3881 = vmatpush3.msra.mxu0 %v3046_v41 }
 0x6f1   : > { %3037 = vmatmul.mubr.f32.vlgmr.msra.gmra.mxu1 %v2846_v37  ;;  %3882 = vmatprep.subr.mxu0 %v3910_v4 }
 0x6f2   : > { %3883 = vmatpush3.msra.mxu0 %v3045_v42 }
 0x6f3   : > { %3884 = vmatprep.subr.mxu0 %v3910_v4 }
 0x6f4   : > { %3885 = vmatpush3.msra.mxu0 %v3044_v43 }
 0x6f5   : > { %3886 = vmatprep.subr.mxu0 %v3910_v4 }
 0x6f6   : > { %3887 = vmatpush3.msra.mxu0 %v3043_v44 }
 0x7a9   : > { %v3538_v45 = vpop.f32.mrf.mxu0 }
 0x7ab   : > { %v3539_v46 = vpop.f32.mrf.mxu0 }
 0x7ac   : > { %v3540_v47 = vadd.f32 %v3539_v46, %v3538_v45 }
 0x7ae   : > { %v2969_v49 = vadd.f32 %v3540_v47, %v2898_v48 }
 0x7b1   : > { %v3038_v50 = vpop.f32.mrf.mxu1 }
 0x7b2   : > { %v3039_v51 = vadd.f32 %v3038_v50, %v2969_v49 }
 0x7b3   : > { %v3040_v52 = vpop.f32.mrf.mxu1 }
 0x7b4   : > { %v3042_v53 = vmax.f32 %v3039_v51, 0.0 }
 0x7b6   : > { %3130 = vst.msk [vmem:[%s544_s19] sm:$0x1] %vm3129_vm11, %v3042_v53  ;;  %3889 = vmatmul.mubr.msk.f32.vlgmr.msra.gmra.mxu0 %vm3051_vm12, %v3042_v53 }
 0x876   : > { %v3125_v55 = vpop.f32.mrf.mxu0 }
 0x877   : > { %v3126_v56 = vadd.f32 %v3125_v55, %v3050_v54 }
 0x878   : > { %v3890_v57 = vpop.f32.mrf.mxu0 }
 0x879   : > { %3132 = vrot.lane.b32.xlu0 %v3126_v56, %s3912_s24 }
 0x8eb   : > { %v3133_v58 = vpop.permute.xlu0 %3132 }
 0x8ec   : > { %3136 = vst.msk [vmem:[%s544_s19] sm:$0x1] %vm3135_vm13, %v3133_v58 }
 0x8ed   : > { %3138 = vst.msk [vmem:[%s544_s19] sm:$0x1] %vm3137_vm14, %v3910_v4 }
 0x8ee PF: > { %s4869_s25 = sld [smem:[#allocation6_spill]] }
 0x8f4   : > { %s27_s24 = sadd.s32 1, %s4869_s25  }
 0x8f5   : > { %p24_p4 = scmp.ge.s32.totalorder %s27_s24, 4  }
 0x8f7   :  { %26 = sbr.rel (!%p24_p4) target bundleno = 3 (0x3), region = 136 }

</bundles_post_ra>
